<compile_context>
chip_gen: v5e
topology: v5e:2x2
jax: 0.10.0
libtpu: 0.0.40
codegen_flags: <defaults>
</compile_context>

<pallas_src>
import jax
import jax.numpy as jnp
from jax.experimental import pallas as pl
from jax.experimental.pallas import tpu as pltpu

_BF16_SUBLANE = 16  # bf16 sublane packing: keep batch tile a multiple of this


def _round_up(x: int, m: int) -> int:
    return ((x + m - 1) // m) * m


def _make_mlp_kernel(num_layers: int):
    """Kernel ref layout: (x_ref, W0, b0, ..., W_{L-1}, b_{L-1}, out_ref).

    Hidden layers: ReLU.  Last layer: numerically stable softmax over classes.
    x / W are bf16 (pre-cast in the wrapper); accumulation, bias add, ReLU and
    softmax run in f32 on the VPU/EUP.
    """

    def kernel(*refs):
        x_ref = refs[0]
        out_ref = refs[-1]
        param_refs = refs[1:-1]

        x = x_ref[...]  # (tile_n, D) bf16
        for layer in range(num_layers):
            w = param_refs[2 * layer][...]        # (Din, Dout) bf16
            b = param_refs[2 * layer + 1][...]    # (1, Dout)   f32
            s = jnp.dot(x, w, preferred_element_type=jnp.float32) + b
            if layer < num_layers - 1:
                # ReLU in f32, then cast once for the next bf16 MXU matmul.
                x = jnp.maximum(s, 0.0).astype(jnp.bfloat16)
            else:
                s = s - jnp.max(s, axis=-1, keepdims=True)
                e = jnp.exp(s)
                denom = jnp.sum(e, axis=-1, keepdims=True)
                # Exact divide: rows sum to 1 to f32 precision (one divide/row).
                out_ref[...] = (e / denom).astype(out_ref.dtype)

    return kernel


def pt_deep_forward(x, weights, biases, *, tile_n: int = 512):
    """PTDeep.forward in one Pallas call.

    x:       (N, D) float
    weights: list of (D_in, D_out) float arrays
    biases:  list of (D_out,) float arrays
    returns: (N, C) float32 softmax probabilities (softmax over dim=1)
    """
    num_layers = len(weights)
    assert len(biases) == num_layers
    n, d = x.shape
    c = weights[-1].shape[1]

    # ---- batch tiling (no pre-padding; ragged last tile handled by Pallas) ---
    tile_n = max(_BF16_SUBLANE,
                 min(_round_up(tile_n, _BF16_SUBLANE), _round_up(n, _BF16_SUBLANE)))
    num_tiles = pl.cdiv(n, tile_n)

    # ---- operands: pre-cast once in the wrapper -----------------------------
    operands = [x.astype(jnp.bfloat16)]
    in_specs = [pl.BlockSpec((tile_n, d), lambda i: (i, 0))]
    for w, b in zip(weights, biases):
        operands.append(w.astype(jnp.bfloat16))
        operands.append(b.reshape(1, -1).astype(jnp.float32))
        # Constant block index -> parameters stay resident in VMEM across steps.
        in_specs.append(pl.BlockSpec(w.shape, lambda i: (0, 0)))
        in_specs.append(pl.BlockSpec((1, b.shape[0]), lambda i: (0, 0)))

    out_spec = pl.BlockSpec((tile_n, c), lambda i: (i, 0))

    # ---- VMEM budget ---------------------------------------------------------
    param_bytes = sum(w.size * 2 + b.size * 4 for w, b in zip(weights, biases))
    widest = max([d] + [w.shape[1] for w in weights])
    stream_bytes = 2 * (tile_n * d * 2) + 2 * (tile_n * c * 4)  # dbl-buffered io
    act_bytes = 4 * (tile_n * widest * 4)                       # f32 temps, slack
    vmem_needed = 2 * param_bytes + stream_bytes + act_bytes + (2 << 20)
    vmem_limit = int(min(64 << 20, max(vmem_needed, 32 << 20)))

    kernel = _make_mlp_kernel(num_layers)

    out = pl.pallas_call(
        kernel,
        out_shape=jax.ShapeDtypeStruct((n, c), jnp.float32),
        grid=(num_tiles,),
        in_specs=in_specs,
        out_specs=out_spec,
        compiler_params=pltpu.CompilerParams(
            dimension_semantics=("parallel",),  # shard batch tiles across TCs
            vmem_limit_bytes=vmem_limit,
        ),
    )(*operands)

    return out


def _reference_forward(x, weights, biases):
    """Pure-JAX reference mirroring PTDeep.forward at the same precision."""

    def mm(a, w):
        return jnp.dot(
            a.astype(jnp.bfloat16),
            w.astype(jnp.bfloat16),
            preferred_element_type=jnp.float32,
        )

    h = x.astype(jnp.float32)
    for i in range(len(weights) - 1):
        h = jnp.maximum(mm(h, weights[i]) + biases[i], 0.0)
    s = mm(h, weights[-1]) + biases[-1]
    return jax.nn.softmax(s, axis=1)


if __name__ == "__main__":
    # PTDeep(D=16, C=8, hidden_layers=[32], activ_f=ReLU), batch N=1024.
    # tile_n=256 -> 4 batch tiles: even tile count (both v7x TCs busy) and a
    # real pipelined grid with VMEM-resident weights.
    D, C = 16, 8
    hidden_layers = [32]
    N = 1024

    key = jax.random.PRNGKey(0)
    k_x, k_w0, k_w1 = jax.random.split(key, 3)

    # Deterministic init mirroring the module: W ~ randn, b = zeros.
    dims = [D] + hidden_layers + [C]
    wkeys = [k_w0, k_w1]
    weights = [
        jax.random.normal(wkeys[i], (dims[i], dims[i + 1]), dtype=jnp.float32)
        for i in range(len(dims) - 1)
    ]
    biases = [
        jnp.zeros((dims[i + 1],), dtype=jnp.float32) for i in range(len(dims) - 1)
    ]

    x = jax.random.normal(k_x, (N, D), dtype=jnp.float32)

    probs = pt_deep_forward(x, weights, biases, tile_n=256)
    probs = jax.block_until_ready(probs)

    ref = _reference_forward(x, weights, biases)

    assert probs.shape == (N, C)
    assert jnp.allclose(jnp.sum(probs, axis=1), 1.0, atol=1e-5)
    assert jnp.allclose(probs, ref, atol=1e-4, rtol=0.0)

    # TODO(synk): get_loss (cross-entropy + L2 reg) is not part of forward();
    # it is intentionally not implemented in the kernel.

    print("KERNEL_OK")
</pallas_src>

<mosaic_0001>
module attributes {stable_mosaic.version = 11 : i64} {
  func.func @kernel(%arg0: i32, %arg1: memref<256x16xbf16, #tpu.memory_space<vmem>>, %arg2: memref<16x32xbf16, #tpu.memory_space<vmem>>, %arg3: memref<1x32xf32, #tpu.memory_space<vmem>>, %arg4: memref<32x8xbf16, #tpu.memory_space<vmem>>, %arg5: memref<1x8xf32, #tpu.memory_space<vmem>>, %arg6: memref<256x8xf32, #tpu.memory_space<vmem>>) attributes {dimension_semantics = [#tpu.dimension_semantics<parallel>], iteration_bounds = array<i64: 4>, scalar_prefetch = 0 : i64, scratch_operands = 0 : i64, tpu.core_type = #tpu.core_type<tc>, window_params = [{transform_indices = @transform_0, window_bounds = array<i64: 256, 16>}, {pipeline_mode = #tpu.pipeline_mode<synchronous>, transform_indices = @transform_1, window_bounds = array<i64: 16, 32>}, {pipeline_mode = #tpu.pipeline_mode<synchronous>, transform_indices = @transform_2, window_bounds = array<i64: 1, 32>}, {pipeline_mode = #tpu.pipeline_mode<synchronous>, transform_indices = @transform_3, window_bounds = array<i64: 32, 8>}, {pipeline_mode = #tpu.pipeline_mode<synchronous>, transform_indices = @transform_4, window_bounds = array<i64: 1, 8>}, {transform_indices = @transform_5, window_bounds = array<i64: 256, 8>}]} {
    %c0 = arith.constant 0 : index
    %c0_0 = arith.constant 0 : index
    %0 = vector.load %arg1[%c0, %c0_0] : memref<256x16xbf16, #tpu.memory_space<vmem>>, vector<256x16xbf16>
    %c0_1 = arith.constant 0 : index
    %c0_2 = arith.constant 0 : index
    %1 = vector.load %arg2[%c0_1, %c0_2] : memref<16x32xbf16, #tpu.memory_space<vmem>>, vector<16x32xbf16>
    %c0_3 = arith.constant 0 : index
    %c0_4 = arith.constant 0 : index
    %2 = vector.load %arg3[%c0_3, %c0_4] : memref<1x32xf32, #tpu.memory_space<vmem>>, vector<1x32xf32>
    %cst = arith.constant dense<0.000000e+00> : vector<256x32xf32>
    %3 = tpu.matmul %0, %1, %cst {dimension_numbers = #tpu.dot_dimension_numbers<[1], [0], [0], [1], [0, 0, 1, 1], [], []>} : vector<256x16xbf16>, vector<16x32xbf16>, vector<256x32xf32> -> vector<256x32xf32>
    %4 = vector.broadcast %2 : vector<1x32xf32> to vector<256x32xf32>
    %5 = arith.addf %3, %4 : vector<256x32xf32>
    %cst_5 = arith.constant 0.000000e+00 : f32
    %6 = vector.broadcast %cst_5 : f32 to vector<256x32xf32>
    %7 = arith.maximumf %5, %6 : vector<256x32xf32>
    %8 = arith.truncf %7 : vector<256x32xf32> to vector<256x32xbf16>
    %c0_6 = arith.constant 0 : index
    %c0_7 = arith.constant 0 : index
    %9 = vector.load %arg4[%c0_6, %c0_7] : memref<32x8xbf16, #tpu.memory_space<vmem>>, vector<32x8xbf16>
    %c0_8 = arith.constant 0 : index
    %c0_9 = arith.constant 0 : index
    %10 = vector.load %arg5[%c0_8, %c0_9] : memref<1x8xf32, #tpu.memory_space<vmem>>, vector<1x8xf32>
    %cst_10 = arith.constant dense<0.000000e+00> : vector<256x8xf32>
    %11 = tpu.matmul %8, %9, %cst_10 {dimension_numbers = #tpu.dot_dimension_numbers<[1], [0], [0], [1], [0, 0, 1, 1], [], []>} : vector<256x32xbf16>, vector<32x8xbf16>, vector<256x8xf32> -> vector<256x8xf32>
    %12 = vector.broadcast %10 : vector<1x8xf32> to vector<256x8xf32>
    %13 = arith.addf %11, %12 : vector<256x8xf32>
    %cst_11 = arith.constant dense<0xFF800000> : vector<256xf32>
    %14 = vector.multi_reduction <maximumf>, %13, %cst_11 [1] : vector<256x8xf32> to vector<256xf32>
    %15 = vector.shape_cast %14 : vector<256xf32> to vector<256x1xf32>
    %16 = vector.broadcast %15 : vector<256x1xf32> to vector<256x8xf32>
    %17 = arith.subf %13, %16 : vector<256x8xf32>
    %18 = math.exp %17 : vector<256x8xf32>
    %cst_12 = arith.constant dense<0.000000e+00> : vector<256xf32>
    %19 = vector.multi_reduction <add>, %18, %cst_12 [1] : vector<256x8xf32> to vector<256xf32>
    %20 = vector.shape_cast %19 : vector<256xf32> to vector<256x1xf32>
    %21 = vector.broadcast %20 : vector<256x1xf32> to vector<256x8xf32>
    %22 = arith.divf %18, %21 : vector<256x8xf32>
    %c0_13 = arith.constant 0 : index
    %c0_14 = arith.constant 0 : index
    %23 = vector.load %arg6[%c0_13, %c0_14] : memref<256x8xf32, #tpu.memory_space<vmem>>, vector<256x8xf32>
    tpu.vector_store %arg6[%c0_13, %c0_14], %22 {strides = array<i32>} : memref<256x8xf32, #tpu.memory_space<vmem>>, vector<256x8xf32>,
    return
  }
  func.func @transform_0(%arg0: i32) -> (i32, i32) {
    %c0_i32 = arith.constant 0 : i32
    %c0_i32_0 = arith.constant 0 : i32
    return %arg0, %c0_i32 : i32, i32
  }
  func.func @transform_1(%arg0: i32) -> (i32, i32) {
    %c0_i32 = arith.constant 0 : i32
    %c0_i32_0 = arith.constant 0 : i32
    %c0_i32_1 = arith.constant 0 : i32
    return %c0_i32, %c0_i32_0 : i32, i32
  }
  func.func @transform_2(%arg0: i32) -> (i32, i32) {
    %c0_i32 = arith.constant 0 : i32
    %c0_i32_0 = arith.constant 0 : i32
    %c0_i32_1 = arith.constant 0 : i32
    return %c0_i32, %c0_i32_0 : i32, i32
  }
  func.func @transform_3(%arg0: i32) -> (i32, i32) {
    %c0_i32 = arith.constant 0 : i32
    %c0_i32_0 = arith.constant 0 : i32
    %c0_i32_1 = arith.constant 0 : i32
    return %c0_i32, %c0_i32_0 : i32, i32
  }
  func.func @transform_4(%arg0: i32) -> (i32, i32) {
    %c0_i32 = arith.constant 0 : i32
    %c0_i32_0 = arith.constant 0 : i32
    %c0_i32_1 = arith.constant 0 : i32
    return %c0_i32, %c0_i32_0 : i32, i32
  }
  func.func @transform_5(%arg0: i32) -> (i32, i32) {
    %c0_i32 = arith.constant 0 : i32
    %c0_i32_0 = arith.constant 0 : i32
    return %arg0, %c0_i32 : i32, i32
  }
}

</mosaic_0001>

<bundles_post_ra>
// kernel: tpu_custom_call.1
= control target key start
LH: loop header
LB: loop body
LE: loop exit
PB: predicated region body
PF: predicated region fallthrough
CT: control target
= control target key end

     0   :  { %s1871_s18 = smov 0   ;;  %s2425_s0 = inlined_call_operand.vmem [shape: bf16[1024,16], index: 0, kind: input, shape index: {}]   ;;  %s2426_s1 = inlined_call_operand.vmem [shape: bf16[16,32], index: 1, kind: input, shape index: {}]   ;;  %s2427_s2 = inlined_call_operand.vmem [shape: f32[1,32], index: 2, kind: input, shape index: {}]   ;;  %s2428_s3 = inlined_call_operand.vmem [shape: bf16[32,8], index: 3, kind: input, shape index: {}]   ;;  %s2429_s4 = inlined_call_operand.vmem [shape: f32[1,8], index: 4, kind: input, shape index: {}]   ;;  %s2430_s5 = inlined_call_operand.vmem [shape: f32[1024,8], index: 5, kind: output, shape index: {}]  }
   0x1 LB: > { %s1554_s19 = sadd.s32 4294967295, %s1839_s18   ;;  %p1558_p0 = scmp.ge.s32.totalorder %s1839_s18, 1  ;;  %s1839_s18 = sphi %s1871_s18, %s15_s18  }
   0x2   : > { %p188_p1 = scmp.lt.s32.totalorder %s1839_s18, 5 }
   0x4   : > { %p189_p2 = pnand %p1558_p0, %p188_p1 }
   0x5   : > { %s1559_s22 = sshll.u32 (!%p189_p2), %s1554_s19, 5 }
   0x6   : > { %192 = sbr.rel (%p189_p2) target bundleno = 802 (0x322), region = 40  ;;  %p217_p3 = scmp.lt.s32.totalorder (!%p189_p2), %s1559_s22, 127 }
   0xb   : > { %v1689_v0 = vld [vmem:[%s2426_s1] sm:$0xff]  ;;  %s2432_s22 = smov (!%p217_p3, %s1559_s22), 127  ;;  %vm353_vm0 = vcmask 130048   ;;  %v1691_v9 = vld [vmem:[%s2428_s3 + $0x8] sm:$0xff]  ;;  %vm559_vm1 = vcmask 261120   ;;  %vm697_vm2 = vcmask 64512  }
   0xc   : > { %409 = vmatpush.bf16.msra.mxu0 %v1689_v0  ;;  %1692 = vmatpush.bf16.msra.mxu3 %v1689_v0  ;;  %s1560_s23 = sshll.u32 %s2432_s22, 2  ;;  %v1690_v10 = vld [vmem:[%s2428_s3] sm:$0xff]  ;;  %s1562_s10 = sshll.u32 %s2432_s22, 3 }
   0xd   : > { %s1888_s26 = scalar_lea.vmem %s2425_s0, %s1560_s23  ;;  %614 = vmatpush.bf16.msra.mxu1 %v1691_v9  ;;  %1693 = vmatpush.bf16.msra.mxu2 %v1691_v9  ;;  %v1920_v15 = vld [vmem:[%s2427_s2] ss:$0 sm:$0xff]  ;;  %s2228_s13 = scalar_lea.vmem %s2430_s5, %s1562_s10 }
   0xe   : > { %v1673_v1 = vld [vmem:[%s1888_s26] sm:$0xff]  ;;  %v1674_v2 = vld [vmem:[%s1888_s26 + $0x8] sm:$0xff]  ;;  %v1675_v3 = vld [vmem:[%s1888_s26 + $0x10] sm:$0xff] }
   0xf   : > { %1631 = vmatmul.msk.bf16.vlgmr.msra.gmra.mxu0 %vm353_vm0, %v1673_v1  ;;  %v1676_v4 = vld [vmem:[%s1888_s26 + $0x18] sm:$0xff]  ;;  %v1677_v5 = vld [vmem:[%s1888_s26 + $0x20] sm:$0xff]  ;;  %v1678_v6 = vld [vmem:[%s1888_s26 + $0x28] sm:$0xff] }
  0x10   : > { %v1679_v7 = vld [vmem:[%s1888_s26 + $0x30] sm:$0xff]  ;;  %v1682_v8 = vld [vmem:[%s1888_s26 + $0x48] sm:$0xff]  ;;  %v1680_v11 = vld [vmem:[%s1888_s26 + $0x38] sm:$0xff] }
  0x11   : > { %1640 = vmatmul.msk.bf16.vlgmr.msra.gmra.mxu3 %vm353_vm0, %v1682_v8  ;;  %615 = vmatpush.bf16.msra.mxu1 %v1690_v10  ;;  %v1683_v12 = vld [vmem:[%s1888_s26 + $0x50] sm:$0xff]  ;;  %v1681_v13 = vld [vmem:[%s1888_s26 + $0x40] sm:$0xff]  ;;  %v1684_v16 = vld [vmem:[%s1888_s26 + $0x58] sm:$0xff] }
  0x12   : > { %1694 = vmatpush.bf16.msra.mxu2 %v1690_v10  ;;  %v1685_v24 = vld [vmem:[%s1888_s26 + $0x60] sm:$0xff]  ;;  %v1686_v32 = vld [vmem:[%s1888_s26 + $0x68] sm:$0xff]  ;;  %v1687_v40 = vld [vmem:[%s1888_s26 + $0x70] sm:$0xff] }
  0x13   : > { %v1688_v48 = vld [vmem:[%s1888_s26 + $0x78] sm:$0xff] }
  0x1f   : > { %1632 = vmatmul.msk.bf16.gmra.mxu0 %vm353_vm0, %v1674_v2 }
  0x21   : > { %1641 = vmatmul.msk.bf16.gmra.mxu3 %vm353_vm0, %v1683_v12 }
  0x2f   : > { %1633 = vmatmul.msk.bf16.gmra.mxu0 %vm353_vm0, %v1675_v3 }
  0x31   : > { %1642 = vmatmul.msk.bf16.gmra.mxu3 %vm353_vm0, %v1684_v16 }
  0x3f   : > { %1634 = vmatmul.msk.bf16.gmra.mxu0 %vm353_vm0, %v1676_v4 }
  0x41   : > { %1643 = vmatmul.msk.bf16.gmra.mxu3 %vm353_vm0, %v1685_v24 }
  0x4f   : > { %1635 = vmatmul.msk.bf16.gmra.mxu0 %vm353_vm0, %v1677_v5 }
  0x51   : > { %1644 = vmatmul.msk.bf16.gmra.mxu3 %vm353_vm0, %v1686_v32 }
  0x5f   : > { %1636 = vmatmul.msk.bf16.gmra.mxu0 %vm353_vm0, %v1678_v6 }
  0x61   : > { %1645 = vmatmul.msk.bf16.gmra.mxu3 %vm353_vm0, %v1687_v40 }
  0x6f   : > { %1637 = vmatmul.msk.bf16.gmra.mxu0 %vm353_vm0, %v1679_v7 }
  0x71   : > { %1646 = vmatmul.msk.bf16.gmra.mxu3 %vm353_vm0, %v1688_v48 }
  0x7f   : > { %1638 = vmatmul.msk.bf16.gmra.mxu0 %vm353_vm0, %v1680_v11 }
  0x8c   : > { %v411_v14 = vpop.f32.mrf.mxu0 }
  0x8d   : > { %v412_v17 = vadd.f32 %v1920_v15, %v411_v14 }
  0x8f   : > { %1639 = vmatmul.msk.bf16.gmra.mxu0 %vm353_vm0, %v1681_v13  ;;  %v491_v20 = vmax.f32 %v412_v17, 0.0 }
  0x94   : > { %v413_v18 = vpop.f32.mrf.mxu0  ;;  %v456_v6 = vpop.f32.mrf.mxu3 }
  0x95   : > { %v414_v19 = vadd.f32 %v1920_v15, %v413_v18 }
  0x97   : > { %v492_v21 = vmax.f32 %v414_v19, 0.0 }
  0x99   : > { %v523_v22 = vpack.c.bf16 %v492_v21, %v491_v20  ;;  %v1962_v20 = vld [vmem:[%s2429_s4] ss:$0 sm:$0xff] }
  0x9b   : > { %1655 = vmatmul.msk.bf16.vlgmr.msra.gmra.mxu1 %vm559_vm1, %v523_v22 }
  0x9c   : > { %v416_v23 = vpop.f32.mrf.mxu0  ;;  %v458_v10 = vpop.f32.mrf.mxu3 }
  0x9d   : > { %v417_v25 = vadd.f32 %v1920_v15, %v416_v23 }
  0x9f   : > { %v493_v28 = vmax.f32 %v417_v25, 0.0 }
  0xa4   : > { %v418_v26 = vpop.f32.mrf.mxu0  ;;  %v461_v16 = vpop.f32.mrf.mxu3 }
  0xa5   : > { %v419_v27 = vadd.f32 %v1920_v15, %v418_v26 }
  0xa7   : > { %v494_v29 = vmax.f32 %v419_v27, 0.0 }
  0xa9   : > { %v524_v30 = vpack.c.bf16 %v494_v29, %v493_v28  ;;  %v457_v29 = vadd.f32 %v1920_v15, %v456_v6 }
  0xab   : > { %1656 = vmatmul.msk.bf16.gmra.mxu1 %vm559_vm1, %v524_v30  ;;  %v459_v30 = vadd.f32 %v1920_v15, %v458_v10 }
  0xac   : > { %v421_v31 = vpop.f32.mrf.mxu0  ;;  %v463_v26 = vpop.f32.mrf.mxu3 }
  0xad   : > { %v422_v33 = vadd.f32 %v1920_v15, %v421_v31 }
  0xaf   : > { %v495_v36 = vmax.f32 %v422_v33, 0.0 }
  0xb4   : > { %v423_v34 = vpop.f32.mrf.mxu0  ;;  %v466_v33 = vpop.f32.mrf.mxu3 }
  0xb5   : > { %v424_v35 = vadd.f32 %v1920_v15, %v423_v34  ;;  %v509_v34 = vmax.f32 %v457_v29, 0.0 }
  0xb7   : > { %v496_v37 = vmax.f32 %v424_v35, 0.0  ;;  %v510_v35 = vmax.f32 %v459_v30, 0.0 }
  0xb9   : > { %v525_v38 = vpack.c.bf16 %v496_v37, %v495_v36  ;;  %v532_v37 = vpack.c.bf16 %v510_v35, %v509_v34 }
  0xbb   : > { %1657 = vmatmul.msk.bf16.gmra.mxu1 %vm559_vm1, %v525_v38 }
  0xbc   : > { %v426_v39 = vpop.f32.mrf.mxu0  ;;  %v468_v40 = vpop.f32.mrf.mxu3 }
  0xbd   : > { %v427_v41 = vadd.f32 %v1920_v15, %v426_v39 }
  0xbf   : > { %v497_v44 = vmax.f32 %v427_v41, 0.0 }
  0xc4   : > { %v428_v42 = vpop.f32.mrf.mxu0 }
  0xc5   : > { %v429_v43 = vadd.f32 %v1920_v15, %v428_v42  ;;  %v462_v42 = vadd.f32 %v1920_v15, %v461_v16 }
  0xc7   : > { %v498_v45 = vmax.f32 %v429_v43, 0.0  ;;  %v464_v43 = vadd.f32 %v1920_v15, %v463_v26 }
  0xc9   : > { %v526_v46 = vpack.c.bf16 %v498_v45, %v497_v44 }
  0xcb   : > { %1658 = vmatmul.msk.bf16.gmra.mxu1 %vm559_vm1, %v526_v46  ;;  %v511_v46 = vmax.f32 %v462_v42, 0.0 }
  0xcc   : > { %v431_v47 = vpop.f32.mrf.mxu0 }
  0xcd   : > { %v432_v49 = vadd.f32 %v1920_v15, %v431_v47  ;;  %v512_v47 = vmax.f32 %v464_v43, 0.0 }
  0xcf   : > { %v499_v52 = vmax.f32 %v432_v49, 0.0  ;;  %v471_v49 = vpop.f32.mrf.mxu3 }
  0xd4   : > { %v433_v50 = vpop.f32.mrf.mxu0 }
  0xd5   : > { %v434_v51 = vadd.f32 %v1920_v15, %v433_v50  ;;  %v533_v50 = vpack.c.bf16 %v512_v47, %v511_v46 }
  0xd7   : > { %v500_v53 = vmax.f32 %v434_v51, 0.0 }
  0xd9   : > { %v527_v54 = vpack.c.bf16 %v500_v53, %v499_v52 }
  0xdb   : > { %1659 = vmatmul.msk.bf16.gmra.mxu1 %vm559_vm1, %v527_v54  ;;  %v467_v54 = vadd.f32 %v1920_v15, %v466_v33 }
  0xdc   : > { %v436_v55 = vpop.f32.mrf.mxu0 }
  0xdd   : > { %v437_v56 = vadd.f32 %v1920_v15, %v436_v55  ;;  %v469_v55 = vadd.f32 %v1920_v15, %v468_v40 }
  0xdf   : > { %v501_v59 = vmax.f32 %v437_v56, 0.0 }
  0xe4   : > { %v438_v57 = vpop.f32.mrf.mxu0 }
  0xe5   : > { %v439_v58 = vadd.f32 %v1920_v15, %v438_v57  ;;  %v473_v57 = vpop.f32.mrf.mxu3 }
  0xe7   : > { %v502_v60 = vmax.f32 %v439_v58, 0.0 }
  0xe9   : > { %v528_v61 = vpack.c.bf16 %v502_v60, %v501_v59  ;;  %v513_v59 = vmax.f32 %v467_v54, 0.0  ;;  %v514_v60 = vmax.f32 %v469_v55, 0.0 }
  0xeb   : > { %1660 = vmatmul.msk.bf16.gmra.mxu1 %vm559_vm1, %v528_v61 }
  0xec   : > { %v441_v62 = vpop.f32.mrf.mxu0 }
  0xed   : > { %v442_v63 = vadd.f32 %v1920_v15, %v441_v62  ;;  %v534_v62 = vpack.c.bf16 %v514_v60, %v513_v59 }
  0xef   : > { %v503_v2 = vmax.f32 %v442_v63, 0.0 }
  0xf4   : > { %v443_v0 = vpop.f32.mrf.mxu0 }
  0xf5   : > { %v444_v1 = vadd.f32 %v1920_v15, %v443_v0 }
  0xf7   : > { %v504_v3 = vmax.f32 %v444_v1, 0.0  ;;  %v476_v1 = vpop.f32.mrf.mxu3 }
  0xf9   : > { %v529_v4 = vpack.c.bf16 %v504_v3, %v503_v2  ;;  %v472_v3 = vadd.f32 %v1920_v15, %v471_v49 }
  0xfb   : > { %1661 = vmatmul.msk.bf16.gmra.mxu1 %vm559_vm1, %v529_v4  ;;  %v474_v4 = vadd.f32 %v1920_v15, %v473_v57 }
  0xfc   : > { %v446_v5 = vpop.f32.mrf.mxu0 }
  0xfd   : > { %v447_v7 = vadd.f32 %v1920_v15, %v446_v5 }
  0xff   : > { %v505_v11 = vmax.f32 %v447_v7, 0.0  ;;  %v515_v7 = vmax.f32 %v472_v3, 0.0 }
 0x104   : > { %v448_v8 = vpop.f32.mrf.mxu0 }
 0x105   : > { %v449_v9 = vadd.f32 %v1920_v15, %v448_v8  ;;  %v516_v8 = vmax.f32 %v474_v4, 0.0 }
 0x107   : > { %v506_v12 = vmax.f32 %v449_v9, 0.0  ;;  %v478_v9 = vpop.f32.mrf.mxu3 }
 0x109   : > { %v530_v13 = vpack.c.bf16 %v506_v12, %v505_v11  ;;  %v535_v11 = vpack.c.bf16 %v516_v8, %v515_v7 }
 0x10b   : > { %1662 = vmatmul.msk.bf16.gmra.mxu1 %vm559_vm1, %v530_v13 }
 0x10c   : > { %v451_v14 = vpop.f32.mrf.mxu0 }
 0x10d   : > { %v452_v17 = vadd.f32 %v1920_v15, %v451_v14 }
 0x10f   : > { %v507_v21 = vmax.f32 %v452_v17, 0.0  ;;  %v481_v16 = vpop.f32.mrf.mxu3  ;;  %v477_v17 = vadd.f32 %v1920_v15, %v476_v1 }
 0x114   : > { %v453_v18 = vpop.f32.mrf.mxu0 }
 0x115   : > { %v454_v19 = vadd.f32 %v1920_v15, %v453_v18  ;;  %v479_v18 = vadd.f32 %v1920_v15, %v478_v9 }
 0x117   : > { %v508_v22 = vmax.f32 %v454_v19, 0.0 }
 0x118   : > { %v617_v23 = vpop.f32.mrf.mxu1 }
 0x119   : > { %v531_v24 = vpack.c.bf16 %v508_v22, %v507_v21  ;;  %v1965_v25 = vadd.f32 %v1962_v20, %v617_v23  ;;  %v517_v22 = vmax.f32 %v477_v17, 0.0  ;;  %v518_v23 = vmax.f32 %v479_v18, 0.0 }
 0x11b   : > { %1663 = vmatmul.msk.bf16.vlgmr.msra.gmra.mxu2 %vm559_vm1, %v531_v24  ;;  %v698_v27 = vsel %vm697_vm2, %v1965_v25, -inf  ;;  %v536_v26 = vpack.c.bf16 %v518_v23, %v517_v22 }
 0x11c   : > { %699 = vmax.xlane.f32.xlu0 %v698_v27 }
 0x120   : > { %v619_v28 = vpop.f32.mrf.mxu1 }
 0x121   : > { %v1973_v31 = vadd.f32 %v1962_v20, %v619_v28  ;;  %v483_v28 = vpop.f32.mrf.mxu3 }
 0x122   : > { %v484_v33 = vadd.f32 %v1920_v15, %v483_v28 }
 0x123   : > { %v701_v32 = vsel %vm697_vm2, %v1973_v31, -inf }
 0x124   : > { %702 = vmax.xlane.f32.xlu0 %v701_v32  ;;  %v482_v32 = vadd.f32 %v1920_v15, %v481_v16 }
 0x128   : > { %v622_v36 = vpop.f32.mrf.mxu1 }
 0x129   : > { %v1978_v38 = vadd.f32 %v1962_v20, %v622_v36  ;;  %v486_v36 = vpop.f32.mrf.mxu3 }
 0x12a   : > { %v487_v47 = vadd.f32 %v1920_v15, %v486_v36 }
 0x12b   : > { %1664 = vmatmul.msk.bf16.gmra.mxu2 %vm559_vm1, %v532_v37  ;;  %v704_v39 = vsel %vm697_vm2, %v1978_v38, -inf  ;;  %v519_v37 = vmax.f32 %v482_v32, 0.0 }
 0x12c   : > { %705 = vmax.xlane.f32.xlu1 %v704_v39  ;;  %v520_v39 = vmax.f32 %v484_v33, 0.0 }
 0x130   : > { %v624_v41 = vpop.f32.mrf.mxu1 }
 0x131   : > { %v1986_v44 = vadd.f32 %v1962_v20, %v624_v41  ;;  %v537_v41 = vpack.c.bf16 %v520_v39, %v519_v37 }
 0x133   : > { %v707_v45 = vsel %vm697_vm2, %v1986_v44, -inf }
 0x134   : > { %708 = vmax.xlane.f32.xlu1 %v707_v45  ;;  %v488_v45 = vpop.f32.mrf.mxu3 }
 0x138   : > { %v627_v48 = vpop.f32.mrf.mxu1 }
 0x139   : > { %v1991_v51 = vadd.f32 %v1962_v20, %v627_v48  ;;  %v489_v48 = vadd.f32 %v1920_v15, %v488_v45 }
 0x13b   : > { %1665 = vmatmul.msk.bf16.gmra.mxu2 %vm559_vm1, %v533_v50  ;;  %v710_v52 = vsel %vm697_vm2, %v1991_v51, -inf }
 0x13c   : > { %711 = vmax.xlane.f32.xlu2 %v710_v52  ;;  %v521_v52 = vmax.f32 %v487_v47, 0.0 }
 0x140   : > { %v629_v53 = vpop.f32.mrf.mxu1 }
 0x141   : > { %v1999_v56 = vadd.f32 %v1962_v20, %v629_v53  ;;  %v522_v53 = vmax.f32 %v489_v48, 0.0 }
 0x143   : > { %v713_v58 = vsel %vm697_vm2, %v1999_v56, -inf  ;;  %v538_v55 = vpack.c.bf16 %v522_v53, %v521_v52 }
 0x144   : > { %714 = vmax.xlane.f32.xlu2 %v713_v58 }
 0x148   : > { %v632_v61 = vpop.f32.mrf.mxu1 }
 0x149   : > { %v2004_v63 = vadd.f32 %v1962_v20, %v632_v61 }
 0x14b   : > { %1666 = vmatmul.msk.bf16.gmra.mxu2 %vm559_vm1, %v534_v62  ;;  %v716_v0 = vsel %vm697_vm2, %v2004_v63, -inf }
 0x14c   : > { %717 = vmax.xlane.f32.xlu0 %v716_v0 }
 0x150   : > { %v634_v2 = vpop.f32.mrf.mxu1 }
 0x151   : > { %v2012_v5 = vadd.f32 %v1962_v20, %v634_v2 }
 0x153   : > { %v719_v6 = vsel %vm697_vm2, %v2012_v5, -inf }
 0x154   : > { %720 = vmax.xlane.f32.xlu1 %v719_v6 }
 0x158   : > { %v637_v10 = vpop.f32.mrf.mxu1 }
 0x159   : > { %v2017_v12 = vadd.f32 %v1962_v20, %v637_v10 }
 0x15b   : > { %1667 = vmatmul.msk.bf16.gmra.mxu2 %vm559_vm1, %v535_v11  ;;  %v722_v13 = vsel %vm697_vm2, %v2017_v12, -inf }
 0x15c   : > { %723 = vmax.xlane.f32.xlu2 %v722_v13 }
 0x160   : > { %v639_v14 = vpop.f32.mrf.mxu1 }
 0x161   : > { %v2025_v19 = vadd.f32 %v1962_v20, %v639_v14 }
 0x163   : > { %v725_v21 = vsel %vm697_vm2, %v2025_v19, -inf }
 0x164   : > { %726 = vmax.xlane.f32.xlu0 %v725_v21 }
 0x168   : > { %v642_v24 = vpop.f32.mrf.mxu1 }
 0x169   : > { %v2030_v27 = vadd.f32 %v1962_v20, %v642_v24 }
 0x16b   : > { %1668 = vmatmul.msk.bf16.gmra.mxu2 %vm559_vm1, %v536_v26  ;;  %v728_v29 = vsel %vm697_vm2, %v2030_v27, -inf }
 0x16c   : > { %729 = vmax.xlane.f32.xlu1 %v728_v29 }
 0x170   : > { %v644_v30 = vpop.f32.mrf.mxu1 }
 0x171   : > { %v2038_v34 = vadd.f32 %v1962_v20, %v644_v30 }
 0x173   : > { %v731_v35 = vsel %vm697_vm2, %v2038_v34, -inf }
 0x174   : > { %732 = vmax.xlane.f32.xlu2 %v731_v35 }
 0x178   : > { %v647_v40 = vpop.f32.mrf.mxu1 }
 0x179   : > { %v2043_v42 = vadd.f32 %v1962_v20, %v647_v40 }
 0x17b   : > { %1669 = vmatmul.msk.bf16.gmra.mxu2 %vm559_vm1, %v537_v41  ;;  %v734_v43 = vsel %vm697_vm2, %v2043_v42, -inf }
 0x17c   : > { %735 = vmax.xlane.f32.xlu0 %v734_v43 }
 0x180   : > { %v649_v46 = vpop.f32.mrf.mxu1 }
 0x181   : > { %v2051_v49 = vadd.f32 %v1962_v20, %v649_v46 }
 0x183   : > { %v737_v50 = vsel %vm697_vm2, %v2051_v49, -inf }
 0x184   : > { %738 = vmax.xlane.f32.xlu1 %v737_v50 }
 0x188   : > { %v652_v54 = vpop.f32.mrf.mxu1 }
 0x189   : > { %v2056_v57 = vadd.f32 %v1962_v20, %v652_v54 }
 0x18b   : > { %1670 = vmatmul.msk.bf16.gmra.mxu2 %vm559_vm1, %v538_v55  ;;  %v740_v58 = vsel %vm697_vm2, %v2056_v57, -inf }
 0x18c   : > { %741 = vmax.xlane.f32.xlu2 %v740_v58 }
 0x18f   : > { %v700_v15 = vpop.xlane.xlu0 %699 }
 0x190   : > { %v794_v59 = vsub.f32 %v1965_v25, %v700_v15  ;;  %v654_v60 = vpop.f32.mrf.mxu1 }
 0x191   : > { %v2063_v61 = vadd.f32 %v1962_v20, %v654_v60 }
 0x192   : > { %v826_v62 = vmul.f32 1.442695, %v794_v59 }
 0x193   : > { %v743_v0 = vsel %vm697_vm2, %v2063_v61, -inf }
 0x194   : > { %1705 = vpow2.f32 %v826_v62  ;;  %744 = vmax.xlane.f32.xlu0 %v743_v0 }
 0x197   : > { %v703_v1 = vpop.xlane.xlu0 %702 }
 0x198   : > { %v795_v2 = vsub.f32 %v1973_v31, %v703_v1 }
 0x19a   : > { %v2068_v3 = vpop.eup %1705  ;;  %v828_v4 = vmul.f32 1.442695, %v795_v2 }
 0x19b   : > { %v890_v6 = vsel %vm697_vm2, %v2068_v3, 0.0 }
 0x19c   : > { %1707 = vpow2.f32 %v828_v4  ;;  %891 = vadd.xlane.f32.xlu2 %v890_v6 }
 0x19e   : > { %v657_v25 = vpop.f32.mrf.mxu2 }
 0x19f   : > { %v2073_v7 = vadd.f32 %v1962_v20, %v657_v25  ;;  %v706_v8 = vpop.xlane.xlu1 %705 }
 0x1a0   : > { %v796_v9 = vsub.f32 %v1978_v38, %v706_v8 }
 0x1a1   : > { %v746_v10 = vsel %vm697_vm2, %v2073_v7, -inf }
 0x1a2   : > { %v2078_v11 = vpop.eup %1707  ;;  %v830_v31 = vmul.f32 1.442695, %v796_v9  ;;  %747 = vmax.xlane.f32.xlu1 %v746_v10 }
 0x1a3   : > { %v893_v13 = vsel %vm697_vm2, %v2078_v11, 0.0 }
 0x1a4   : > { %1709 = vpow2.f32 %v830_v31  ;;  %894 = vadd.xlane.f32.xlu0 %v893_v13 }
 0x1a6   : > { %v659_v14 = vpop.f32.mrf.mxu2 }
 0x1a7   : > { %v2083_v16 = vadd.f32 %v1962_v20, %v659_v14  ;;  %v709_v17 = vpop.xlane.xlu1 %708 }
 0x1a8   : > { %v797_v18 = vsub.f32 %v1986_v44, %v709_v17 }
 0x1a9   : > { %v749_v38 = vsel %vm697_vm2, %v2083_v16, -inf }
 0x1aa   : > { %v2088_v21 = vpop.eup %1709  ;;  %v832_v22 = vmul.f32 1.442695, %v797_v18  ;;  %750 = vmax.xlane.f32.xlu2 %v749_v38 }
 0x1ab   : > { %v896_v23 = vsel %vm697_vm2, %v2088_v21, 0.0 }
 0x1ac   : > { %1711 = vpow2.f32 %v832_v22  ;;  %897 = vadd.xlane.f32.xlu1 %v896_v23 }
 0x1ae   : > { %v662_v24 = vpop.f32.mrf.mxu2 }
 0x1af   : > { %v2093_v26 = vadd.f32 %v1962_v20, %v662_v24  ;;  %v712_v28 = vpop.xlane.xlu2 %711 }
 0x1b0   : > { %v798_v29 = vsub.f32 %v1991_v51, %v712_v28 }
 0x1b1   : > { %v752_v44 = vsel %vm697_vm2, %v2093_v26, -inf }
 0x1b2   : > { %v2098_v30 = vpop.eup %1711  ;;  %v834_v32 = vmul.f32 1.442695, %v798_v29  ;;  %753 = vmax.xlane.f32.xlu0 %v752_v44 }
 0x1b3   : > { %v899_v33 = vsel %vm697_vm2, %v2098_v30, 0.0 }
 0x1b4   : > { %1713 = vpow2.f32 %v834_v32  ;;  %900 = vadd.xlane.f32.xlu2 %v899_v33 }
 0x1b6   : > { %v664_v35 = vpop.f32.mrf.mxu2 }
 0x1b7   : > { %v2103_v36 = vadd.f32 %v1962_v20, %v664_v35  ;;  %v715_v37 = vpop.xlane.xlu2 %714 }
 0x1b8   : > { %v799_v39 = vsub.f32 %v1999_v56, %v715_v37 }
 0x1b9   : > { %v755_v51 = vsel %vm697_vm2, %v2103_v36, -inf }
 0x1ba   : > { %v2108_v40 = vpop.eup %1713  ;;  %v836_v41 = vmul.f32 1.442695, %v799_v39  ;;  %756 = vmax.xlane.f32.xlu1 %v755_v51 }
 0x1bb   : > { %v902_v43 = vsel %vm697_vm2, %v2108_v40, 0.0 }
 0x1bc   : > { %1715 = vpow2.f32 %v836_v41  ;;  %903 = vadd.xlane.f32.xlu0 %v902_v43 }
 0x1be   : > { %v667_v45 = vpop.f32.mrf.mxu2 }
 0x1bf   : > { %v2113_v46 = vadd.f32 %v1962_v20, %v667_v45  ;;  %v718_v47 = vpop.xlane.xlu0 %717 }
 0x1c0   : > { %v800_v48 = vsub.f32 %v2004_v63, %v718_v47 }
 0x1c1   : > { %v758_v56 = vsel %vm697_vm2, %v2113_v46, -inf }
 0x1c2   : > { %v2118_v50 = vpop.eup %1715  ;;  %v838_v52 = vmul.f32 1.442695, %v800_v48  ;;  %759 = vmax.xlane.f32.xlu2 %v758_v56 }
 0x1c3   : > { %v905_v53 = vsel %vm697_vm2, %v2118_v50, 0.0 }
 0x1c4   : > { %1717 = vpow2.f32 %v838_v52  ;;  %906 = vadd.xlane.f32.xlu1 %v905_v53 }
 0x1c6   : > { %v669_v54 = vpop.f32.mrf.mxu2 }
 0x1c7   : > { %v2123_v55 = vadd.f32 %v1962_v20, %v669_v54  ;;  %v721_v58 = vpop.xlane.xlu1 %720 }
 0x1c8   : > { %v801_v15 = vsub.f32 %v2012_v5, %v721_v58 }
 0x1c9   : > { %v761_v63 = vsel %vm697_vm2, %v2123_v55, -inf }
 0x1ca   : > { %v2128_v59 = vpop.eup %1717  ;;  %v840_v60 = vmul.f32 1.442695, %v801_v15  ;;  %762 = vmax.xlane.f32.xlu0 %v761_v63 }
 0x1cb   : > { %v908_v62 = vsel %vm697_vm2, %v2128_v59, 0.0 }
 0x1cc   : > { %1719 = vpow2.f32 %v840_v60  ;;  %909 = vadd.xlane.f32.xlu2 %v908_v62 }
 0x1ce   : > { %v672_v0 = vpop.f32.mrf.mxu2 }
 0x1cf   : > { %v2133_v1 = vadd.f32 %v1962_v20, %v672_v0  ;;  %v724_v2 = vpop.xlane.xlu2 %723 }
 0x1d0   : > { %v802_v4 = vsub.f32 %v2017_v12, %v724_v2 }
 0x1d1   : > { %v764_v5 = vsel %vm697_vm2, %v2133_v1, -inf }
 0x1d2   : > { %v2138_v6 = vpop.eup %1719  ;;  %v842_v25 = vmul.f32 1.442695, %v802_v4  ;;  %765 = vmax.xlane.f32.xlu1 %v764_v5 }
 0x1d3   : > { %v911_v8 = vsel %vm697_vm2, %v2138_v6, 0.0 }
 0x1d4   : > { %1721 = vpow2.f32 %v842_v25  ;;  %912 = vadd.xlane.f32.xlu0 %v911_v8 }
 0x1d6   : > { %v674_v9 = vpop.f32.mrf.mxu2 }
 0x1d7   : > { %v2143_v10 = vadd.f32 %v1962_v20, %v674_v9  ;;  %v727_v31 = vpop.xlane.xlu0 %726 }
 0x1d8   : > { %v803_v13 = vsub.f32 %v2025_v19, %v727_v31 }
 0x1d9   : > { %v767_v12 = vsel %vm697_vm2, %v2143_v10, -inf }
 0x1da   : > { %v2148_v14 = vpop.eup %1721  ;;  %v844_v17 = vmul.f32 1.442695, %v803_v13  ;;  %768 = vmax.xlane.f32.xlu2 %v767_v12 }
 0x1db   : > { %v914_v18 = vsel %vm697_vm2, %v2148_v14, 0.0 }
 0x1dc   : > { %1723 = vpow2.f32 %v844_v17  ;;  %915 = vadd.xlane.f32.xlu1 %v914_v18 }
 0x1de   : > { %v677_v38 = vpop.f32.mrf.mxu2 }
 0x1df   : > { %v2153_v22 = vadd.f32 %v1962_v20, %v677_v38  ;;  %v730_v23 = vpop.xlane.xlu1 %729 }
 0x1e0   : > { %v804_v24 = vsub.f32 %v2030_v27, %v730_v23 }
 0x1e1   : > { %v770_v19 = vsel %vm697_vm2, %v2153_v22, -inf }
 0x1e2   : > { %v2158_v28 = vpop.eup %1723  ;;  %v846_v29 = vmul.f32 1.442695, %v804_v24  ;;  %771 = vmax.xlane.f32.xlu0 %v770_v19 }
 0x1e3   : > { %v917_v44 = vsel %vm697_vm2, %v2158_v28, 0.0 }
 0x1e4   : > { %1725 = vpow2.f32 %v846_v29  ;;  %918 = vadd.xlane.f32.xlu2 %v917_v44 }
 0x1e6   : > { %v679_v32 = vpop.f32.mrf.mxu2 }
 0x1e7   : > { %v2163_v33 = vadd.f32 %v1962_v20, %v679_v32  ;;  %v733_v52 = vpop.xlane.xlu2 %732 }
 0x1e8   : > { %v805_v13 = vsub.f32 %v2038_v34, %v733_v52 }
 0x1e9   : > { %v773_v35 = vsel %vm697_vm2, %v2163_v33, -inf }
 0x1ea   : > { %v2167_v27 = vpop.eup %1725  ;;  %774 = vmax.xlane.f32.xlu1 %v773_v35  ;;  %v848_v18 = vmul.f32 1.442695, %v805_v13 }
 0x1eb   : > { %v920_v37 = vsel %vm697_vm2, %v2167_v27, 0.0 }
 0x1ec   : > { %921 = vadd.xlane.f32.xlu0 %v920_v37 }
 0x1ee   : > { %v682_v39 = vpop.f32.mrf.mxu2 }
 0x1ef   : > { %v2172_v51 = vadd.f32 %v1962_v20, %v682_v39  ;;  %v736_v48 = vpop.xlane.xlu0 %735 }
 0x1f0   : > { %v806_v54 = vsub.f32 %v2043_v42, %v736_v48 }
 0x1f1   : > { %v776_v41 = vsel %vm697_vm2, %v2172_v51, -inf }
 0x1f2   : > { %777 = vmax.xlane.f32.xlu2 %v776_v41  ;;  %v850_v15 = vmul.f32 1.442695, %v806_v54 }
 0x1f4   : > { %1727 = vpow2.f32 %v850_v15 }
 0x1f6   : > { %v684_v43 = vpop.f32.mrf.mxu2 }
 0x1f7   : > { %v2177_v45 = vadd.f32 %v1962_v20, %v684_v43  ;;  %v739_v63 = vpop.xlane.xlu1 %738 }
 0x1f8   : > { %v807_v62 = vsub.f32 %v2051_v49, %v739_v63 }
 0x1f9   : > { %v779_v47 = vsel %vm697_vm2, %v2177_v45, -inf }
 0x1fa   : > { %780 = vmax.xlane.f32.xlu0 %v779_v47  ;;  %v852_v25 = vmul.f32 1.442695, %v807_v62  ;;  %v2194_v9 = vpop.eup %1727 }
 0x1fb   : > { %v926_v17 = vsel %vm697_vm2, %v2194_v9, 0.0 }
 0x1fc   : > { %1729 = vpow2.f32 %v852_v25 }
 0x1fe   : > { %v687_v56 = vpop.f32.mrf.mxu2 }
 0x1ff   : > { %v2182_v53 = vadd.f32 %v1962_v20, %v687_v56  ;;  %v742_v0 = vpop.xlane.xlu2 %741 }
 0x200   : > { %v808_v24 = vsub.f32 %v2056_v57, %v742_v0 }
 0x201   : > { %v782_v58 = vsel %vm697_vm2, %v2182_v53, -inf }
 0x202   : > { %783 = vmax.xlane.f32.xlu1 %v782_v58  ;;  %v2204_v38 = vpop.eup %1729 }
 0x203   : > { %v929_v57 = vsel %vm697_vm2, %v2204_v38, 0.0 }
 0x206   : > { %v689_v60 = vpop.f32.mrf.mxu2 }
 0x207   : > { %v2189_v2 = vadd.f32 %v1962_v20, %v689_v60  ;;  %v745_v4 = vpop.xlane.xlu0 %744 }
 0x208   : > { %v809_v5 = vsub.f32 %v2063_v61, %v745_v4 }
 0x209   : > { %v785_v42 = vsel %vm697_vm2, %v2189_v2, -inf }
 0x20a   : > { %786 = vmax.xlane.f32.xlu2 %v785_v42  ;;  %v856_v8 = vmul.f32 1.442695, %v809_v5 }
 0x20e   : > { %v692_v31 = vpop.f32.mrf.mxu2 }
 0x20f   : > { %v2198_v49 = vadd.f32 %v1962_v20, %v692_v31  ;;  %v892_v12 = vpop.xlane.xlu2 %891 }
 0x210   : > { %1731 = vrcp.f32 %v892_v12  ;;  %v997_v47 = vand.u32 2147483648, %v892_v12  ;;  %v995_v56 = vand.u32 2147483647, %v892_v12  ;;  %vm991_vm4 = vweird.f32 %v892_v12 }
 0x211   : > { %1733 = vpow2.f32 %v856_v8  ;;  %v788_v61 = vsel %vm697_vm2, %v2198_v49, -inf }
 0x212   : > { %789 = vmax.xlane.f32.xlu0 %v788_v61  ;;  %927 = vadd.xlane.f32.xlu2 %v926_v17  ;;  %1735 = vpow2.f32 %v848_v18  ;;  %v998_v63 = vor.u32 1.1754944e-38, %v997_v47  ;;  %vm996_vm6 = vcmp.eq.f32.partialorder %v995_v56, 8.507059e+37 }
 0x215   : > { %v748_v23 = vpop.xlane.xlu1 %747 }
 0x216   : > { %v1732_v34 = vpop.eup %1731  ;;  %v810_v19 = vsub.f32 %v2073_v7, %v748_v23  ;;  %v694_v29 = vpop.f32.mrf.mxu2  ;;  %v854_v7 = vmul.f32 1.442695, %v808_v24 }
 0x217   : > { %v2208_v44 = vpop.eup %1733  ;;  %v987_v32 = vmul.f32 %v1732_v34, %v892_v12  ;;  %v2211_v35 = vadd.f32 %v1962_v20, %v694_v29  ;;  %v895_v37 = vpop.xlane.xlu0 %894  ;;  %vm992_vm3 = vweird.f32 %v1732_v34 }
 0x218   : > { %v858_v39 = vmul.f32 1.442695, %v810_v19  ;;  %1737 = vrcp.f32 %v895_v37  ;;  %v935_v20 = vsel %vm697_vm2, %v2208_v44, 0.0  ;;  %v2219_v52 = vpop.eup %1735  ;;  %vm993_vm5 = vmor %vm991_vm4, %vm992_vm3  ;;  %v1012_v13 = vand.u32 2147483648, %v895_v37 }
 0x219   : > { %v988_v41 = vsub.f32 1.0, %v987_v32  ;;  %v791_v43 = vsel %vm697_vm2, %v2211_v35, -inf  ;;  %v923_v31 = vsel %vm697_vm2, %v2219_v52, 0.0  ;;  %v1010_v61 = vand.u32 2147483647, %v895_v37 }
 0x21a   : > { %1739 = vpow2.f32 %v858_v39  ;;  %792 = vmax.xlane.f32.xlu1 %v791_v43  ;;  %930 = vadd.xlane.f32.xlu0 %v929_v57  ;;  %vm1006_vm8 = vweird.f32 %v895_v37  ;;  %v1013_v24 = vor.u32 1.1754944e-38, %v1012_v13 }
 0x21b   : > { %v989_v48 = vmul.f32 %v1732_v34, %v988_v41  ;;  %936 = vadd.xlane.f32.xlu2 %v935_v20  ;;  %1741 = vpow2.f32 %v854_v7  ;;  %vm1011_vm10 = vcmp.eq.f32.partialorder %v1010_v61, 8.507059e+37 }
 0x21d   : > { %v990_v54 = vadd.f32 %v1732_v34, %v989_v48  ;;  %v751_v58 = vpop.xlane.xlu2 %750 }
 0x21e   : > { %v1738_v15 = vpop.eup %1737  ;;  %v811_v0 = vsub.f32 %v2083_v16, %v751_v58 }
 0x21f   : > { %v994_v60 = vsel %vm993_vm5, %v1732_v34, %v990_v54  ;;  %v1002_v62 = vmul.f32 %v1738_v15, %v895_v37  ;;  %v898_v4 = vpop.xlane.xlu1 %897  ;;  %vm1007_vm7 = vweird.f32 %v1738_v15 }
 0x220   : > { %v2223_v5 = vpop.eup %1739  ;;  %v999_v42 = vsel %vm996_vm6, %v998_v63, %v994_v60  ;;  %1743 = vrcp.f32 %v898_v4  ;;  %v860_v17 = vmul.f32 1.442695, %v811_v0  ;;  %vm1008_vm9 = vmor %vm1006_vm8, %vm1007_vm7  ;;  %v1027_v47 = vand.u32 2147483648, %v898_v4 }
 0x221   : > { %v1000_v25 = vmul.f32 %v2068_v3, %v999_v42  ;;  %v1003_v8 = vsub.f32 1.0, %v1002_v62  ;;  %v938_v16 = vsel %vm697_vm2, %v2223_v5, 0.0  ;;  %v2237_v18 = vpop.eup %1741  ;;  %v1025_v20 = vand.u32 2147483647, %v898_v4 }
 0x222   : > { %924 = vadd.xlane.f32.xlu1 %v923_v31  ;;  %939 = vadd.xlane.f32.xlu0 %v938_v16  ;;  %1745 = vpow2.f32 %v860_v17  ;;  %v932_v37 = vsel %vm697_vm2, %v2237_v18, 0.0  ;;  %vm1021_vm12 = vweird.f32 %v898_v4 }
 0x223   : > { %1466 = vst.msk [vmem:[%s2228_s13] sm:$0xff] %vm697_vm2, %v1000_v25  ;;  %v1004_v12 = vmul.f32 %v1738_v15, %v1003_v8  ;;  %vm1026_vm14 = vcmp.eq.f32.partialorder %v1025_v20, 8.507059e+37 }
 0x225   : > { %v1005_v23 = vadd.f32 %v1738_v15, %v1004_v12  ;;  %v754_v3 = vpop.xlane.xlu0 %753 }
 0x226   : > { %v1744_v34 = vpop.eup %1743  ;;  %v812_v19 = vsub.f32 %v2093_v26, %v754_v3 }
 0x227   : > { %v1009_v29 = vsel %vm1008_vm9, %v1738_v15, %v1005_v23  ;;  %v1017_v32 = vmul.f32 %v1744_v34, %v898_v4  ;;  %v901_v39 = vpop.xlane.xlu2 %900  ;;  %vm1022_vm11 = vweird.f32 %v1744_v34 }
 0x228   : > { %v1014_v41 = vsel %vm1011_vm10, %v1013_v24, %v1009_v29  ;;  %v862_v43 = vmul.f32 1.442695, %v812_v19  ;;  %1747 = vrcp.f32 %v901_v39  ;;  %v2245_v48 = vpop.eup %1745  ;;  %vm1023_vm13 = vmor %vm1021_vm12, %vm1022_vm11  ;;  %v1042_v13 = vand.u32 2147483648, %v901_v39 }
 0x229   : > { %v1015_v57 = vmul.f32 %v2078_v11, %v1014_v41  ;;  %v1018_v7 = vsub.f32 1.0, %v1017_v32  ;;  %v1028_v11 = vor.u32 1.1754944e-38, %v1027_v47  ;;  %v941_v4 = vsel %vm697_vm2, %v2245_v48, 0.0 }
 0x22a   : > { %1749 = vpow2.f32 %v862_v43  ;;  %933 = vadd.xlane.f32.xlu1 %v932_v37  ;;  %v1040_v12 = vand.u32 2147483647, %v901_v39  ;;  %vm1036_vm0 = vweird.f32 %v901_v39  ;;  %v1043_v23 = vor.u32 1.1754944e-38, %v1042_v13 }
 0x22b   : > { %1467 = vst.msk [vmem:[%s2228_s13 + $0x8] sm:$0xff] %vm697_vm2, %v1015_v57  ;;  %v1019_v26 = vmul.f32 %v1744_v34, %v1018_v7 }
 0x22c   : > { %vm1041_vm3 = vcmp.eq.f32.partialorder %v1040_v12, 8.507059e+37 }
 0x22d   : > { %v1020_v56 = vadd.f32 %v1744_v34, %v1019_v26  ;;  %v757_v54 = vpop.xlane.xlu1 %756 }
 0x22e   : > { %v1748_v58 = vpop.eup %1747  ;;  %v813_v15 = vsub.f32 %v2103_v36, %v757_v54 }
 0x22f   : > { %v1024_v63 = vsel %vm1023_vm13, %v1744_v34, %v1020_v56  ;;  %v1032_v60 = vmul.f32 %v1748_v58, %v901_v39  ;;  %v904_v62 = vpop.xlane.xlu0 %903  ;;  %vm1037_vm15 = vweird.f32 %v1748_v58 }
 0x230   : > { %v2248_v0 = vpop.eup %1749  ;;  %v1029_v42 = vsel %vm1026_vm14, %v1028_v11, %v1024_v63  ;;  %v864_v25 = vmul.f32 1.442695, %v813_v15  ;;  %1751 = vrcp.f32 %v904_v62  ;;  %vm1038_vm1 = vmor %vm1036_vm0, %vm1037_vm15  ;;  %v1057_v39 = vand.u32 2147483648, %v904_v62 }
 0x231   : > { %v1030_v8 = vmul.f32 %v2088_v21, %v1029_v42  ;;  %v1033_v31 = vsub.f32 1.0, %v1032_v60  ;;  %v944_v36 = vsel %vm697_vm2, %v2248_v0, 0.0  ;;  %v1055_v37 = vand.u32 2147483647, %v904_v62 }
 0x232   : > { %1753 = vpow2.f32 %v864_v25  ;;  %942 = vadd.xlane.f32.xlu1 %v941_v4  ;;  %945 = vadd.xlane.f32.xlu2 %v944_v36  ;;  %vm1051_vm5 = vweird.f32 %v904_v62  ;;  %v1058_v56 = vor.u32 1.1754944e-38, %v1057_v39 }
 0x233   : > { %1468 = vst.msk [vmem:[%s2228_s13 + $0x10] sm:$0xff] %vm697_vm2, %v1030_v8  ;;  %v1034_v16 = vmul.f32 %v1748_v58, %v1033_v31  ;;  %vm1056_vm7 = vcmp.eq.f32.partialorder %v1055_v37, 8.507059e+37 }
 0x235   : > { %v1035_v61 = vadd.f32 %v1748_v58, %v1034_v16  ;;  %v760_v17 = vpop.xlane.xlu2 %759 }
 0x236   : > { %v1752_v21 = vpop.eup %1751  ;;  %v814_v3 = vsub.f32 %v2113_v46, %v760_v17 }
 0x237   : > { %v1039_v34 = vsel %vm1038_vm1, %v1748_v58, %v1035_v61  ;;  %v1047_v24 = vmul.f32 %v1752_v21, %v904_v62  ;;  %v907_v19 = vpop.xlane.xlu1 %906  ;;  %vm1052_vm4 = vweird.f32 %v1752_v21 }
 0x238   : > { %v2258_v29 = vpop.eup %1753  ;;  %v1044_v32 = vsel %vm1041_vm3, %v1043_v23, %v1039_v34  ;;  %v866_v41 = vmul.f32 1.442695, %v814_v3  ;;  %1755 = vrcp.f32 %v907_v19  ;;  %vm1053_vm6 = vmor %vm1051_vm5, %vm1052_vm4  ;;  %v1072_v62 = vand.u32 2147483648, %v907_v19 }
 0x239   : > { %v1045_v43 = vmul.f32 %v2098_v30, %v1044_v32  ;;  %v1048_v57 = vsub.f32 1.0, %v1047_v24  ;;  %v947_v7 = vsel %vm697_vm2, %v2258_v29, 0.0  ;;  %v1070_v31 = vand.u32 2147483647, %v907_v19 }
 0x23a   : > { %1757 = vpow2.f32 %v866_v41  ;;  %948 = vadd.xlane.f32.xlu0 %v947_v7  ;;  %vm1066_vm9 = vweird.f32 %v907_v19  ;;  %v1073_v16 = vor.u32 1.1754944e-38, %v1072_v62 }
 0x23b   : > { %1469 = vst.msk [vmem:[%s2228_s13 + $0x18] sm:$0xff] %vm697_vm2, %v1045_v43  ;;  %v1049_v46 = vmul.f32 %v1752_v21, %v1048_v57  ;;  %vm1071_vm11 = vcmp.eq.f32.partialorder %v1070_v31, 8.507059e+37 }
 0x23d   : > { %v1050_v47 = vadd.f32 %v1752_v21, %v1049_v46  ;;  %v763_v26 = vpop.xlane.xlu0 %762 }
 0x23e   : > { %v1756_v20 = vpop.eup %1755  ;;  %v815_v30 = vsub.f32 %v2123_v55, %v763_v26 }
 0x23f   : > { %v1054_v54 = vsel %vm1053_vm6, %v1752_v21, %v1050_v47  ;;  %v1062_v58 = vmul.f32 %v1756_v20, %v907_v19  ;;  %v910_v11 = vpop.xlane.xlu2 %909  ;;  %vm1067_vm8 = vweird.f32 %v1756_v20 }
 0x240   : > { %v2266_v15 = vpop.eup %1757  ;;  %v1059_v63 = vsel %vm1056_vm7, %v1058_v56, %v1054_v54  ;;  %v868_v60 = vmul.f32 1.442695, %v815_v30  ;;  %1759 = vrcp.f32 %v910_v11  ;;  %vm1068_vm10 = vmor %vm1066_vm9, %vm1067_vm8  ;;  %v1087_v19 = vand.u32 2147483648, %v910_v11 }
 0x241   : > { %v1060_v42 = vmul.f32 %v2108_v40, %v1059_v63  ;;  %v1063_v25 = vsub.f32 1.0, %v1062_v58  ;;  %v950_v8 = vsel %vm697_vm2, %v2266_v15, 0.0  ;;  %v1085_v41 = vand.u32 2147483647, %v910_v11 }
 0x242   : > { %1761 = vpow2.f32 %v868_v60  ;;  %951 = vadd.xlane.f32.xlu1 %v950_v8  ;;  %vm1081_vm13 = vweird.f32 %v910_v11  ;;  %v1088_v7 = vor.u32 1.1754944e-38, %v1087_v19 }
 0x243   : > { %1470 = vst.msk [vmem:[%s2228_s13 + $0x20] sm:$0xff] %vm697_vm2, %v1060_v42  ;;  %v1064_v55 = vmul.f32 %v1756_v20, %v1063_v25  ;;  %vm1086_vm15 = vcmp.eq.f32.partialorder %v1085_v41, 8.507059e+37 }
 0x245   : > { %v1065_v4 = vadd.f32 %v1756_v20, %v1064_v55  ;;  %v766_v13 = vpop.xlane.xlu1 %765 }
 0x246   : > { %v1760_v36 = vpop.eup %1759  ;;  %v816_v40 = vsub.f32 %v2133_v1, %v766_v13 }
 0x247   : > { %v1069_v12 = vsel %vm1068_vm10, %v1756_v20, %v1065_v4  ;;  %v1077_v61 = vmul.f32 %v1760_v36, %v910_v11  ;;  %v913_v17 = vpop.xlane.xlu0 %912  ;;  %vm1082_vm12 = vweird.f32 %v1760_v36 }
 0x248   : > { %v2274_v21 = vpop.eup %1761  ;;  %v1074_v23 = vsel %vm1071_vm11, %v1073_v16, %v1069_v12  ;;  %v870_v3 = vmul.f32 1.442695, %v816_v40  ;;  %1763 = vrcp.f32 %v913_v17  ;;  %vm1083_vm14 = vmor %vm1081_vm13, %vm1082_vm12  ;;  %v1102_v58 = vand.u32 2147483648, %v913_v17 }
 0x249   : > { %v1075_v34 = vmul.f32 %v2118_v50, %v1074_v23  ;;  %v1078_v24 = vsub.f32 1.0, %v1077_v61  ;;  %v953_v32 = vsel %vm697_vm2, %v2274_v21, 0.0  ;;  %v1100_v63 = vand.u32 2147483647, %v913_v17 }
 0x24a   : > { %1765 = vpow2.f32 %v870_v3  ;;  %954 = vadd.xlane.f32.xlu2 %v953_v32  ;;  %vm1096_vm1 = vweird.f32 %v913_v17  ;;  %v1103_v62 = vor.u32 1.1754944e-38, %v1102_v58 }
 0x24b   : > { %1471 = vst.msk [vmem:[%s2228_s13 + $0x28] sm:$0xff] %vm697_vm2, %v1075_v34  ;;  %v1079_v1 = vmul.f32 %v1760_v36, %v1078_v24  ;;  %vm1101_vm4 = vcmp.eq.f32.partialorder %v1100_v63, 8.507059e+37 }
 0x24d   : > { %v1080_v43 = vadd.f32 %v1760_v36, %v1079_v1  ;;  %v769_v57 = vpop.xlane.xlu2 %768 }
 0x24e   : > { %v1764_v39 = vpop.eup %1763  ;;  %v817_v50 = vsub.f32 %v2143_v10, %v769_v57 }
 0x24f   : > { %v1084_v46 = vsel %vm1083_vm14, %v1760_v36, %v1080_v43  ;;  %v1092_v37 = vmul.f32 %v1764_v39, %v913_v17  ;;  %v916_v47 = vpop.xlane.xlu1 %915  ;;  %vm1097_vm0 = vweird.f32 %v1764_v39 }
 0x250   : > { %v2282_v26 = vpop.eup %1765  ;;  %v1089_v20 = vsel %vm1086_vm15, %v1088_v7, %v1084_v46  ;;  %v872_v56 = vmul.f32 1.442695, %v817_v50  ;;  %1767 = vrcp.f32 %v916_v47  ;;  %vm1098_vm3 = vmor %vm1096_vm1, %vm1097_vm0  ;;  %v1117_v12 = vand.u32 2147483648, %v916_v47 }
 0x251   : > { %v1090_v30 = vmul.f32 %v2128_v59, %v1089_v20  ;;  %v1093_v54 = vsub.f32 1.0, %v1092_v37  ;;  %v956_v11 = vsel %vm697_vm2, %v2282_v26, 0.0  ;;  %v1115_v17 = vand.u32 2147483647, %v916_v47 }
 0x252   : > { %1769 = vpow2.f32 %v872_v56  ;;  %957 = vadd.xlane.f32.xlu0 %v956_v11  ;;  %vm1111_vm6 = vweird.f32 %v916_v47  ;;  %v1118_v24 = vor.u32 1.1754944e-38, %v1117_v12 }
 0x253   : > { %1472 = vst.msk [vmem:[%s2228_s13 + $0x30] sm:$0xff] %vm697_vm2, %v1090_v30  ;;  %v1094_v10 = vmul.f32 %v1764_v39, %v1093_v54  ;;  %vm1116_vm8 = vcmp.eq.f32.partialorder %v1115_v17, 8.507059e+37 }
 0x255   : > { %v1095_v60 = vadd.f32 %v1764_v39, %v1094_v10  ;;  %v772_v42 = vpop.xlane.xlu0 %771 }
 0x256   : > { %v1768_v25 = vpop.eup %1767  ;;  %v818_v59 = vsub.f32 %v2153_v22, %v772_v42 }
 0x257   : > { %v1099_v8 = vsel %vm1098_vm3, %v1764_v39, %v1095_v60  ;;  %v1107_v55 = vmul.f32 %v1768_v25, %v916_v47  ;;  %v919_v31 = vpop.xlane.xlu2 %918  ;;  %vm1112_vm5 = vweird.f32 %v1768_v25 }
 0x258   : > { %v2290_v4 = vpop.eup %1769  ;;  %v1104_v13 = vsel %vm1101_vm4, %v1103_v62, %v1099_v8  ;;  %v874_v36 = vmul.f32 1.442695, %v818_v59  ;;  %1771 = vrcp.f32 %v919_v31  ;;  %vm1113_vm7 = vmor %vm1111_vm6, %vm1112_vm5  ;;  %v1132_v50 = vand.u32 2147483648, %v919_v31 }
 0x259   : > { %v1105_v16 = vmul.f32 %v2138_v6, %v1104_v13  ;;  %v1108_v40 = vsub.f32 1.0, %v1107_v55  ;;  %v959_v61 = vsel %vm697_vm2, %v2290_v4, 0.0  ;;  %v1130_v37 = vand.u32 2147483647, %v919_v31 }
 0x25a   : > { %1773 = vpow2.f32 %v874_v36  ;;  %960 = vadd.xlane.f32.xlu1 %v959_v61  ;;  %vm1126_vm10 = vweird.f32 %v919_v31  ;;  %v1133_v30 = vor.u32 1.1754944e-38, %v1132_v50 }
 0x25b   : > { %1473 = vst.msk [vmem:[%s2228_s13 + $0x38] sm:$0xff] %vm697_vm2, %v1105_v16  ;;  %v1109_v22 = vmul.f32 %v1768_v25, %v1108_v40  ;;  %vm1131_vm12 = vcmp.eq.f32.partialorder %v1130_v37, 8.507059e+37 }
 0x25d   : > { %v1110_v23 = vadd.f32 %v1768_v25, %v1109_v22  ;;  %v775_v3 = vpop.xlane.xlu1 %774 }
 0x25e   : > { %v1772_v34 = vpop.eup %1771  ;;  %v819_v6 = vsub.f32 %v2163_v33, %v775_v3 }
 0x25f   : > { %v1114_v19 = vsel %vm1113_vm7, %v1768_v25, %v1110_v23  ;;  %v1122_v32 = vmul.f32 %v1772_v34, %v919_v31  ;;  %v922_v1 = vpop.xlane.xlu0 %921  ;;  %vm1127_vm9 = vweird.f32 %v1772_v34 }
 0x260   : > { %v2298_v41 = vpop.eup %1773  ;;  %v1119_v43 = vsel %vm1116_vm8, %v1118_v24, %v1114_v19  ;;  %v876_v57 = vmul.f32 1.442695, %v819_v6  ;;  %1775 = vrcp.f32 %v922_v1  ;;  %vm1128_vm11 = vmor %vm1126_vm10, %vm1127_vm9  ;;  %v1147_v62 = vand.u32 2147483648, %v922_v1 }
 0x261   : > { %v1120_v39 = vmul.f32 %v2148_v14, %v1119_v43  ;;  %v1123_v7 = vsub.f32 1.0, %v1122_v32  ;;  %v962_v46 = vsel %vm697_vm2, %v2298_v41, 0.0  ;;  %vm1141_vm14 = vweird.f32 %v922_v1 }
 0x262   : > { %1777 = vpow2.f32 %v876_v57  ;;  %963 = vadd.xlane.f32.xlu2 %v962_v46  ;;  %v1148_v31 = vor.u32 1.1754944e-38, %v1147_v62 }
 0x263   : > { %1474 = vst.msk [vmem:[%s2228_s13 + $0x40] sm:$0xff] %vm697_vm2, %v1120_v39  ;;  %v1124_v33 = vmul.f32 %v1772_v34, %v1123_v7 }
 0x265   : > { %v1125_v47 = vadd.f32 %v1772_v34, %v1124_v33  ;;  %v778_v20 = vpop.xlane.xlu2 %777 }
 0x266   : > { %v1776_v56 = vpop.eup %1775  ;;  %v820_v14 = vsub.f32 %v2172_v51, %v778_v20  ;;  %v1145_v51 = vand.u32 2147483647, %v922_v1 }
 0x267   : > { %v1129_v54 = vsel %vm1128_vm11, %v1772_v34, %v1125_v47  ;;  %v1137_v58 = vmul.f32 %v1776_v56, %v922_v1  ;;  %vm1142_vm13 = vweird.f32 %v1776_v56 }
 0x268   : > { %v2306_v11 = vpop.eup %1777  ;;  %v1134_v10 = vsel %vm1131_vm12, %v1133_v30, %v1129_v54  ;;  %v878_v63 = vmul.f32 1.442695, %v820_v14  ;;  %vm1143_vm15 = vmor %vm1141_vm14, %vm1142_vm13  ;;  %vm1146_vm0 = vcmp.eq.f32.partialorder %v1145_v51, 8.507059e+37 }
 0x269   : > { %v1135_v60 = vmul.f32 %v2158_v28, %v1134_v10  ;;  %v1138_v42 = vsub.f32 1.0, %v1137_v58  ;;  %v965_v25 = vsel %vm697_vm2, %v2306_v11, 0.0 }
 0x26a   : > { %1779 = vpow2.f32 %v878_v63  ;;  %966 = vadd.xlane.f32.xlu0 %v965_v25 }
 0x26b   : > { %1475 = vst.msk [vmem:[%s2228_s13 + $0x48] sm:$0xff] %vm697_vm2, %v1135_v60  ;;  %v1139_v59 = vmul.f32 %v1776_v56, %v1138_v42 }
 0x26d   : > { %v1140_v8 = vadd.f32 %v1776_v56, %v1139_v59  ;;  %v781_v55 = vpop.xlane.xlu0 %780 }
 0x26e   : > { %v821_v28 = vsub.f32 %v2177_v45, %v781_v55 }
 0x26f   : > { %v1144_v13 = vsel %vm1143_vm15, %v1776_v56, %v1140_v8 }
 0x270   : > { %v2314_v36 = vpop.eup %1779  ;;  %v1149_v16 = vsel %vm1146_vm0, %v1148_v31, %v1144_v13  ;;  %v880_v40 = vmul.f32 1.442695, %v821_v28 }
 0x271   : > { %v1150_v12 = vmul.f32 %v2167_v27, %v1149_v16  ;;  %v968_v61 = vsel %vm697_vm2, %v2314_v36, 0.0 }
 0x272   : > { %1781 = vpow2.f32 %v880_v40  ;;  %969 = vadd.xlane.f32.xlu1 %v968_v61 }
 0x273   : > { %1476 = vst.msk [vmem:[%s2228_s13 + $0x50] sm:$0xff] %vm697_vm2, %v1150_v12 }
 0x275   : > { %v784_v22 = vpop.xlane.xlu1 %783 }
 0x276   : > { %v822_v17 = vsub.f32 %v2182_v53, %v784_v22 }
 0x278   : > { %v2322_v23 = vpop.eup %1781  ;;  %v882_v45 = vmul.f32 1.442695, %v822_v17 }
 0x279   : > { %v971_v3 = vsel %vm697_vm2, %v2322_v23, 0.0 }
 0x27a   : > { %1783 = vpow2.f32 %v882_v45  ;;  %972 = vadd.xlane.f32.xlu2 %v971_v3 }
 0x27d   : > { %v787_v34 = vpop.xlane.xlu2 %786 }
 0x27e   : > { %v823_v27 = vsub.f32 %v2189_v2, %v787_v34 }
 0x280   : > { %v2327_v24 = vpop.eup %1783  ;;  %v884_v6 = vmul.f32 1.442695, %v823_v27 }
 0x281   : > { %v974_v19 = vsel %vm697_vm2, %v2327_v24, 0.0 }
 0x282   : > { %1785 = vpow2.f32 %v884_v6  ;;  %975 = vadd.xlane.f32.xlu0 %v974_v19 }
 0x285   : > { %v928_v53 = vpop.xlane.xlu2 %927  ;;  %v790_v32 = vpop.xlane.xlu0 %789 }
 0x286   : > { %1787 = vrcp.f32 %v928_v53  ;;  %v824_v1 = vsub.f32 %v2198_v49, %v790_v32  ;;  %v1177_v20 = vand.u32 2147483648, %v928_v53  ;;  %v1175_v14 = vand.u32 2147483647, %v928_v53 }
 0x287   : > { %vm1171_vm3 = vweird.f32 %v928_v53 }
 0x288   : > { %v2332_v43 = vpop.eup %1785  ;;  %v886_v57 = vmul.f32 1.442695, %v824_v1  ;;  %vm1176_vm5 = vcmp.eq.f32.partialorder %v1175_v14, 8.507059e+37 }
 0x289   : > { %v977_v39 = vsel %vm697_vm2, %v2332_v43, 0.0 }
 0x28a   : > { %978 = vadd.xlane.f32.xlu1 %v977_v39  ;;  %1789 = vpow2.f32 %v886_v57 }
 0x28c   : > { %v1788_v2 = vpop.eup %1787 }
 0x28d   : > { %v1167_v7 = vmul.f32 %v1788_v2, %v928_v53  ;;  %v793_v50 = vpop.xlane.xlu1 %792  ;;  %v931_v46 = vpop.xlane.xlu0 %930  ;;  %vm1172_vm1 = vweird.f32 %v1788_v2 }
 0x28e   : > { %v825_v33 = vsub.f32 %v2211_v35, %v793_v50  ;;  %v937_v37 = vpop.xlane.xlu2 %936  ;;  %1791 = vrcp.f32 %v931_v46  ;;  %vm1173_vm4 = vmor %vm1171_vm3, %vm1172_vm1  ;;  %v1178_v35 = vor.u32 1.1754944e-38, %v1177_v20  ;;  %v1192_v13 = vand.u32 2147483648, %v931_v46 }
 0x28f   : > { %v1168_v47 = vsub.f32 1.0, %v1167_v7  ;;  %1793 = vrcp.f32 %v937_v37  ;;  %v1222_v16 = vand.u32 2147483648, %v937_v37  ;;  %v1190_v12 = vand.u32 2147483647, %v931_v46 }
 0x290   : > { %v888_v49 = vmul.f32 1.442695, %v825_v33  ;;  %v2337_v56 = vpop.eup %1789  ;;  %v1220_v22 = vand.u32 2147483647, %v937_v37  ;;  %vm1186_vm8 = vweird.f32 %v931_v46  ;;  %vm1216_vm9 = vweird.f32 %v937_v37 }
 0x291   : > { %v1169_v30 = vmul.f32 %v1788_v2, %v1168_v47  ;;  %v980_v54 = vsel %vm697_vm2, %v2337_v56, 0.0  ;;  %v1193_v34 = vor.u32 1.1754944e-38, %v1192_v13  ;;  %v1223_v27 = vor.u32 1.1754944e-38, %v1222_v16 }
 0x292   : > { %1795 = vpow2.f32 %v888_v49  ;;  %981 = vadd.xlane.f32.xlu2 %v980_v54  ;;  %vm1191_vm12 = vcmp.eq.f32.partialorder %v1190_v12, 8.507059e+37  ;;  %vm1221_vm13 = vcmp.eq.f32.partialorder %v1220_v22, 8.507059e+37 }
 0x293   : > { %v1170_v58 = vadd.f32 %v1788_v2, %v1169_v30 }
 0x294   : > { %v1792_v10 = vpop.eup %1791 }
 0x295   : > { %v1794_v63 = vpop.eup %1793  ;;  %v1174_v60 = vsel %vm1173_vm4, %v1788_v2, %v1170_v58  ;;  %v1182_v42 = vmul.f32 %v1792_v10, %v931_v46  ;;  %v2341_v25 = vpop.xlane.xlu1 %924  ;;  %vm1187_vm6 = vweird.f32 %v1792_v10 }
 0x296   : > { %v1179_v62 = vsel %vm1176_vm5, %v1178_v35, %v1174_v60  ;;  %v1212_v59 = vmul.f32 %v1794_v63, %v937_v37  ;;  %1797 = vrcp.f32 %v2341_v25  ;;  %v2344_v51 = vpop.xlane.xlu0 %939  ;;  %vm1217_vm7 = vweird.f32 %v1794_v63  ;;  %vm1188_vm10 = vmor %vm1186_vm8, %vm1187_vm6 }
 0x297   : > { %v1180_v8 = vmul.f32 %v2194_v9, %v1179_v62  ;;  %v1183_v55 = vsub.f32 1.0, %v1182_v42  ;;  %1799 = vrcp.f32 %v2344_v51  ;;  %vm1218_vm11 = vmor %vm1216_vm9, %vm1217_vm7  ;;  %v1162_v33 = vand.u32 2147483648, %v2341_v25 }
 0x298   : > { %v2347_v31 = vpop.eup %1795  ;;  %v1213_v28 = vsub.f32 1.0, %v1212_v59  ;;  %v1160_v47 = vand.u32 2147483647, %v2341_v25  ;;  %vm1156_vm15 = vweird.f32 %v2341_v25  ;;  %vm1231_vm3 = vweird.f32 %v2344_v51 }
 0x299   : > { %1478 = vst.msk [vmem:[%s2228_s13 + $0x60] sm:$0xff] %vm697_vm2, %v1180_v8  ;;  %v1184_v40 = vmul.f32 %v1792_v10, %v1183_v55  ;;  %v983_v17 = vsel %vm697_vm2, %v2347_v31, 0.0  ;;  %v1163_v54 = vor.u32 1.1754944e-38, %v1162_v33 }
 0x29a   : > { %v1214_v61 = vmul.f32 %v1794_v63, %v1213_v28  ;;  %984 = vadd.xlane.f32.xlu0 %v983_v17  ;;  %vm1161_vm4 = vcmp.eq.f32.partialorder %v1160_v47, 8.507059e+37 }
 0x29b   : > { %v1185_v9 = vadd.f32 %v1792_v10, %v1184_v40 }
 0x29c   : > { %v1798_v45 = vpop.eup %1797  ;;  %v1215_v3 = vadd.f32 %v1794_v63, %v1214_v61 }
 0x29d   : > { %v1189_v6 = vsel %vm1188_vm10, %v1792_v10, %v1185_v9  ;;  %v1152_v19 = vmul.f32 %v1798_v45, %v2341_v25  ;;  %v934_v53 = vpop.xlane.xlu1 %933  ;;  %v1800_v32 = vpop.eup %1799  ;;  %vm1157_vm14 = vweird.f32 %v1798_v45 }
 0x29e   : > { %v1219_v1 = vsel %vm1218_vm11, %v1794_v63, %v1215_v3  ;;  %v1194_v57 = vsel %vm1191_vm12, %v1193_v34, %v1189_v6  ;;  %1801 = vrcp.f32 %v934_v53  ;;  %v1227_v50 = vmul.f32 %v1800_v32, %v2344_v51  ;;  %vm1158_vm1 = vmor %vm1156_vm15, %vm1157_vm14 }
 0x29f   : > { %v1224_v39 = vsel %vm1221_vm13, %v1223_v27, %v1219_v1  ;;  %v1195_v2 = vmul.f32 %v2204_v38, %v1194_v57  ;;  %v1153_v7 = vsub.f32 1.0, %v1152_v19  ;;  %v1237_v38 = vand.u32 2147483648, %v2344_v51 }
 0x2a0   : > { %v1225_v46 = vmul.f32 %v2208_v44, %v1224_v39  ;;  %v1228_v20 = vsub.f32 1.0, %v1227_v50  ;;  %vm1232_vm0 = vweird.f32 %v1800_v32  ;;  %v1235_v44 = vand.u32 2147483647, %v2344_v51 }
 0x2a1   : > { %1479 = vst.msk [vmem:[%s2228_s13 + $0x68] sm:$0xff] %vm697_vm2, %v1195_v2  ;;  %v1154_v37 = vmul.f32 %v1798_v45, %v1153_v7  ;;  %vm1233_vm5 = vmor %vm1231_vm3, %vm1232_vm0  ;;  %v1238_v42 = vor.u32 1.1754944e-38, %v1237_v38  ;;  %v1207_v28 = vand.u32 2147483648, %v934_v53  ;;  %v1205_v16 = vand.u32 2147483647, %v934_v53 }
 0x2a2   : > { %1481 = vst.msk [vmem:[%s2228_s13 + $0x78] sm:$0xff] %vm697_vm2, %v1225_v46  ;;  %v1229_v30 = vmul.f32 %v1800_v32, %v1228_v20  ;;  %vm1236_vm6 = vcmp.eq.f32.partialorder %v1235_v44, 8.507059e+37  ;;  %vm1201_vm8 = vweird.f32 %v934_v53 }
 0x2a3   : > { %v1155_v49 = vadd.f32 %v1798_v45, %v1154_v37  ;;  %vm1206_vm10 = vcmp.eq.f32.partialorder %v1205_v16, 8.507059e+37 }
 0x2a4   : > { %v1802_v14 = vpop.eup %1801  ;;  %v1230_v10 = vadd.f32 %v1800_v32, %v1229_v30 }
 0x2a5   : > { %v1159_v58 = vsel %vm1158_vm1, %v1798_v45, %v1155_v49  ;;  %v1197_v35 = vmul.f32 %v1802_v14, %v934_v53  ;;  %v943_v63 = vpop.xlane.xlu1 %942  ;;  %v946_v25 = vpop.xlane.xlu2 %945  ;;  %vm1202_vm7 = vweird.f32 %v1802_v14 }
 0x2a6   : > { %v1164_v60 = vsel %vm1161_vm4, %v1163_v54, %v1159_v58  ;;  %1803 = vrcp.f32 %v943_v63  ;;  %v1234_v59 = vsel %vm1233_vm5, %v1800_v32, %v1230_v10  ;;  %vm1203_vm9 = vmor %vm1201_vm8, %vm1202_vm7  ;;  %v1252_v27 = vand.u32 2147483648, %v943_v63 }
 0x2a7   : > { %v1165_v62 = vmul.f32 %v2219_v52, %v1164_v60  ;;  %v1198_v8 = vsub.f32 1.0, %v1197_v35  ;;  %v1239_v55 = vsel %vm1236_vm6, %v1238_v42, %v1234_v59  ;;  %1805 = vrcp.f32 %v946_v25 }
 0x2a8   : > { %v1240_v51 = vmul.f32 %v2223_v5, %v1239_v55  ;;  %v1208_v52 = vor.u32 1.1754944e-38, %v1207_v28  ;;  %v1250_v19 = vand.u32 2147483647, %v943_v63  ;;  %vm1246_vm12 = vweird.f32 %v943_v63 }
 0x2a9   : > { %1477 = vst.msk [vmem:[%s2228_s13 + $0x58] sm:$0xff] %vm697_vm2, %v1165_v62  ;;  %v1199_v13 = vmul.f32 %v1802_v14, %v1198_v8  ;;  %v1267_v32 = vand.u32 2147483648, %v946_v25  ;;  %v1265_v39 = vand.u32 2147483647, %v946_v25  ;;  %v1253_v2 = vor.u32 1.1754944e-38, %v1252_v27 }
 0x2aa   : > { %1482 = vst.msk [vmem:[%s2228_s13 + $0x80] sm:$0xff] %vm697_vm2, %v1240_v51  ;;  %vm1251_vm15 = vcmp.eq.f32.partialorder %v1250_v19, 8.507059e+37  ;;  %vm1261_vm0 = vweird.f32 %v946_v25 }
 0x2ab   : > { %v1200_v40 = vadd.f32 %v1802_v14, %v1199_v13  ;;  %v1268_v33 = vor.u32 1.1754944e-38, %v1267_v32  ;;  %vm1266_vm3 = vcmp.eq.f32.partialorder %v1265_v39, 8.507059e+37 }
 0x2ac   : > { %v1804_v12 = vpop.eup %1803 }
 0x2ad   : > { %v1204_v61 = vsel %vm1203_vm9, %v1802_v14, %v1200_v40  ;;  %v1242_v22 = vmul.f32 %v1804_v12, %v943_v63  ;;  %v1806_v17 = vpop.eup %1805  ;;  %v949_v45 = vpop.xlane.xlu0 %948  ;;  %vm1247_vm11 = vweird.f32 %v1804_v12 }
 0x2ae   : > { %v1209_v9 = vsel %vm1206_vm10, %v1208_v52, %v1204_v61  ;;  %v1257_v34 = vmul.f32 %v1806_v17, %v946_v25  ;;  %1807 = vrcp.f32 %v949_v45  ;;  %vm1262_vm13 = vweird.f32 %v1806_v17  ;;  %vm1248_vm14 = vmor %vm1246_vm12, %vm1247_vm11 }
 0x2af   : > { %v1210_v3 = vmul.f32 %v2237_v18, %v1209_v9  ;;  %v1243_v5 = vsub.f32 1.0, %v1242_v22  ;;  %vm1263_vm1 = vmor %vm1261_vm0, %vm1262_vm13  ;;  %v1282_v14 = vand.u32 2147483648, %v949_v45  ;;  %v1280_v58 = vand.u32 2147483647, %v949_v45 }
 0x2b0   : > { %v1258_v53 = vsub.f32 1.0, %v1257_v34  ;;  %vm1276_vm5 = vweird.f32 %v949_v45 }
 0x2b1   : > { %1480 = vst.msk [vmem:[%s2228_s13 + $0x70] sm:$0xff] %vm697_vm2, %v1210_v3  ;;  %v1244_v6 = vmul.f32 %v1804_v12, %v1243_v5  ;;  %v1283_v35 = vor.u32 1.1754944e-38, %v1282_v14  ;;  %vm1281_vm7 = vcmp.eq.f32.partialorder %v1280_v58, 8.507059e+37 }
 0x2b2   : > { %v1259_v57 = vmul.f32 %v1806_v17, %v1258_v53 }
 0x2b3   : > { %v1245_v1 = vadd.f32 %v1804_v12, %v1244_v6 }
 0x2b4   : > { %v1260_v7 = vadd.f32 %v1806_v17, %v1259_v57  ;;  %v1808_v50 = vpop.eup %1807 }
 0x2b5   : > { %v1249_v18 = vsel %vm1248_vm14, %v1804_v12, %v1245_v1  ;;  %v952_v37 = vpop.xlane.xlu1 %951  ;;  %v1272_v38 = vmul.f32 %v1808_v50, %v949_v45  ;;  %vm1277_vm4 = vweird.f32 %v1808_v50 }
 0x2b6   : > { %v1254_v46 = vsel %vm1251_vm15, %v1253_v2, %v1249_v18  ;;  %v1264_v20 = vsel %vm1263_vm1, %v1806_v17, %v1260_v7  ;;  %1809 = vrcp.f32 %v952_v37  ;;  %vm1278_vm6 = vmor %vm1276_vm5, %vm1277_vm4  ;;  %v1297_v59 = vand.u32 2147483648, %v952_v37 }
 0x2b7   : > { %v1255_v47 = vmul.f32 %v2245_v48, %v1254_v46  ;;  %v1269_v49 = vsel %vm1266_vm3, %v1268_v33, %v1264_v20  ;;  %v1273_v44 = vsub.f32 1.0, %v1272_v38  ;;  %v1295_v55 = vand.u32 2147483647, %v952_v37 }
 0x2b8   : > { %v1270_v30 = vmul.f32 %v2248_v0, %v1269_v49  ;;  %vm1291_vm9 = vweird.f32 %v952_v37  ;;  %v1298_v13 = vor.u32 1.1754944e-38, %v1297_v59 }
 0x2b9   : > { %1483 = vst.msk [vmem:[%s2228_s13 + $0x88] sm:$0xff] %vm697_vm2, %v1255_v47  ;;  %v1274_v54 = vmul.f32 %v1808_v50, %v1273_v44  ;;  %vm1296_vm11 = vcmp.eq.f32.partialorder %v1295_v55, 8.507059e+37 }
 0x2ba   : > { %1484 = vst.msk [vmem:[%s2228_s13 + $0x90] sm:$0xff] %vm697_vm2, %v1270_v30 }
 0x2bb   : > { %v1275_v10 = vadd.f32 %v1808_v50, %v1274_v54 }
 0x2bc   : > { %v1810_v48 = vpop.eup %1809 }
 0x2bd   : > { %v955_v63 = vpop.xlane.xlu2 %954  ;;  %v1279_v60 = vsel %vm1278_vm6, %v1808_v50, %v1275_v10  ;;  %v1287_v42 = vmul.f32 %v1810_v48, %v952_v37  ;;  %vm1292_vm8 = vweird.f32 %v1810_v48 }
 0x2be   : > { %1811 = vrcp.f32 %v955_v63  ;;  %v1284_v25 = vsel %vm1281_vm7, %v1283_v35, %v1279_v60  ;;  %vm1293_vm10 = vmor %vm1291_vm9, %vm1292_vm8  ;;  %v1312_v22 = vand.u32 2147483648, %v955_v63  ;;  %v1310_v9 = vand.u32 2147483647, %v955_v63 }
 0x2bf   : > { %v1285_v0 = vmul.f32 %v2258_v29, %v1284_v25  ;;  %v1288_v62 = vsub.f32 1.0, %v1287_v42  ;;  %vm1306_vm13 = vweird.f32 %v955_v63 }
 0x2c0   : > { %v1313_v5 = vor.u32 1.1754944e-38, %v1312_v22  ;;  %vm1311_vm15 = vcmp.eq.f32.partialorder %v1310_v9, 8.507059e+37 }
 0x2c1   : > { %1485 = vst.msk [vmem:[%s2228_s13 + $0x98] sm:$0xff] %vm697_vm2, %v1285_v0  ;;  %v1289_v8 = vmul.f32 %v1810_v48, %v1288_v62 }
 0x2c3   : > { %v1290_v51 = vadd.f32 %v1810_v48, %v1289_v8 }
 0x2c4   : > { %v1812_v28 = vpop.eup %1811 }
 0x2c5   : > { %v1302_v16 = vmul.f32 %v1812_v28, %v955_v63  ;;  %v958_v40 = vpop.xlane.xlu0 %957  ;;  %v1294_v12 = vsel %vm1293_vm10, %v1810_v48, %v1290_v51  ;;  %vm1307_vm12 = vweird.f32 %v1812_v28 }
 0x2c6   : > { %1813 = vrcp.f32 %v958_v40  ;;  %v1299_v52 = vsel %vm1296_vm11, %v1298_v13, %v1294_v12  ;;  %vm1308_vm14 = vmor %vm1306_vm13, %vm1307_vm12  ;;  %v1327_v32 = vand.u32 2147483648, %v958_v40  ;;  %v1325_v57 = vand.u32 2147483647, %v958_v40 }
 0x2c7   : > { %v1303_v29 = vsub.f32 1.0, %v1302_v16  ;;  %v1300_v61 = vmul.f32 %v2266_v15, %v1299_v52  ;;  %vm1321_vm1 = vweird.f32 %v958_v40 }
 0x2c8   : > { %v1328_v18 = vor.u32 1.1754944e-38, %v1327_v32  ;;  %vm1326_vm4 = vcmp.eq.f32.partialorder %v1325_v57, 8.507059e+37 }
 0x2c9   : > { %v1304_v17 = vmul.f32 %v1812_v28, %v1303_v29  ;;  %1486 = vst.msk [vmem:[%s2228_s13 + $0xa0] sm:$0xff] %vm697_vm2, %v1300_v61 }
 0x2cb   : > { %v1305_v45 = vadd.f32 %v1812_v28, %v1304_v17 }
 0x2cc   : > { %v1814_v3 = vpop.eup %1813 }
 0x2cd   : > { %v1309_v34 = vsel %vm1308_vm14, %v1812_v28, %v1305_v45  ;;  %v1317_v27 = vmul.f32 %v1814_v3, %v958_v40  ;;  %v961_v6 = vpop.xlane.xlu1 %960  ;;  %vm1322_vm0 = vweird.f32 %v1814_v3 }
 0x2ce   : > { %v1314_v19 = vsel %vm1311_vm15, %v1313_v5, %v1309_v34  ;;  %1815 = vrcp.f32 %v961_v6  ;;  %vm1323_vm3 = vmor %vm1321_vm1, %vm1322_vm0  ;;  %v1342_v47 = vand.u32 2147483648, %v961_v6  ;;  %v1340_v38 = vand.u32 2147483647, %v961_v6 }
 0x2cf   : > { %v1315_v15 = vmul.f32 %v2274_v21, %v1314_v19  ;;  %v1318_v53 = vsub.f32 1.0, %v1317_v27  ;;  %vm1336_vm6 = vweird.f32 %v961_v6 }
 0x2d0   : > { %v1343_v44 = vor.u32 1.1754944e-38, %v1342_v47  ;;  %vm1341_vm8 = vcmp.eq.f32.partialorder %v1340_v38, 8.507059e+37 }
 0x2d1   : > { %1487 = vst.msk [vmem:[%s2228_s13 + $0xa8] sm:$0xff] %vm697_vm2, %v1315_v15  ;;  %v1319_v1 = vmul.f32 %v1814_v3, %v1318_v53 }
 0x2d3   : > { %v1320_v39 = vadd.f32 %v1814_v3, %v1319_v1 }
 0x2d4   : > { %v1816_v2 = vpop.eup %1815 }
 0x2d5   : > { %v1324_v7 = vsel %vm1323_vm3, %v1814_v3, %v1320_v39  ;;  %v1332_v50 = vmul.f32 %v1816_v2, %v961_v6  ;;  %v964_v46 = vpop.xlane.xlu2 %963  ;;  %vm1337_vm5 = vweird.f32 %v1816_v2 }
 0x2d6   : > { %v1329_v33 = vsel %vm1326_vm4, %v1328_v18, %v1324_v7  ;;  %1817 = vrcp.f32 %v964_v46  ;;  %vm1338_vm7 = vmor %vm1336_vm6, %vm1337_vm5  ;;  %v1357_v35 = vand.u32 2147483648, %v964_v46  ;;  %v1355_v60 = vand.u32 2147483647, %v964_v46 }
 0x2d7   : > { %v1330_v21 = vmul.f32 %v2282_v26, %v1329_v33  ;;  %v1333_v37 = vsub.f32 1.0, %v1332_v50  ;;  %vm1351_vm10 = vweird.f32 %v964_v46 }
 0x2d8   : > { %v1358_v0 = vor.u32 1.1754944e-38, %v1357_v35  ;;  %vm1356_vm12 = vcmp.eq.f32.partialorder %v1355_v60, 8.507059e+37 }
 0x2d9   : > { %1488 = vst.msk [vmem:[%s2228_s13 + $0xb0] sm:$0xff] %vm697_vm2, %v1330_v21  ;;  %v1334_v20 = vmul.f32 %v1816_v2, %v1333_v37 }
 0x2db   : > { %v1335_v49 = vadd.f32 %v1816_v2, %v1334_v20 }
 0x2dc   : > { %v1818_v30 = vpop.eup %1817 }
 0x2dd   : > { %v967_v14 = vpop.xlane.xlu0 %966  ;;  %v1339_v54 = vsel %vm1338_vm7, %v1816_v2, %v1335_v49  ;;  %v1347_v58 = vmul.f32 %v1818_v30, %v964_v46  ;;  %vm1352_vm9 = vweird.f32 %v1818_v30 }
 0x2de   : > { %1819 = vrcp.f32 %v967_v14  ;;  %v1344_v10 = vsel %vm1341_vm8, %v1343_v44, %v1339_v54  ;;  %vm1353_vm11 = vmor %vm1351_vm10, %vm1352_vm9  ;;  %v1372_v51 = vand.u32 2147483648, %v967_v14  ;;  %v1370_v16 = vand.u32 2147483647, %v967_v14 }
 0x2df   : > { %v1345_v26 = vmul.f32 %v2290_v4, %v1344_v10  ;;  %v1348_v48 = vsub.f32 1.0, %v1347_v58  ;;  %vm1366_vm14 = vweird.f32 %v967_v14 }
 0x2e0   : > { %v1373_v52 = vor.u32 1.1754944e-38, %v1372_v51  ;;  %vm1371_vm0 = vcmp.eq.f32.partialorder %v1370_v16, 8.507059e+37 }
 0x2e1   : > { %1489 = vst.msk [vmem:[%s2228_s13 + $0xb8] sm:$0xff] %vm697_vm2, %v1345_v26  ;;  %v1349_v63 = vmul.f32 %v1818_v30, %v1348_v48 }
 0x2e3   : > { %v1350_v25 = vadd.f32 %v1818_v30, %v1349_v63 }
 0x2e4   : > { %v1820_v42 = vpop.eup %1819 }
 0x2e5   : > { %v1362_v62 = vmul.f32 %v1820_v42, %v967_v14  ;;  %v970_v59 = vpop.xlane.xlu1 %969  ;;  %v1354_v8 = vsel %vm1353_vm11, %v1818_v30, %v1350_v25  ;;  %vm1367_vm13 = vweird.f32 %v1820_v42 }
 0x2e6   : > { %1821 = vrcp.f32 %v970_v59  ;;  %v1359_v55 = vsel %vm1356_vm12, %v1358_v0, %v1354_v8  ;;  %vm1368_vm15 = vmor %vm1366_vm14, %vm1367_vm13  ;;  %v1387_v45 = vand.u32 2147483648, %v970_v59  ;;  %v1385_v5 = vand.u32 2147483647, %v970_v59 }
 0x2e7   : > { %v1363_v4 = vsub.f32 1.0, %v1362_v62  ;;  %v1360_v28 = vmul.f32 %v2298_v41, %v1359_v55  ;;  %vm1381_vm3 = vweird.f32 %v970_v59 }
 0x2e8   : > { %v1388_v6 = vor.u32 1.1754944e-38, %v1387_v45  ;;  %vm1386_vm5 = vcmp.eq.f32.partialorder %v1385_v5, 8.507059e+37 }
 0x2e9   : > { %v1364_v13 = vmul.f32 %v1820_v42, %v1363_v4  ;;  %1490 = vst.msk [vmem:[%s2228_s13 + $0xc0] sm:$0xff] %vm697_vm2, %v1360_v28 }
 0x2eb   : > { %v1365_v40 = vadd.f32 %v1820_v42, %v1364_v13 }
 0x2ec   : > { %v1822_v12 = vpop.eup %1821 }
 0x2ed   : > { %v1369_v29 = vsel %vm1368_vm15, %v1820_v42, %v1365_v40  ;;  %v1377_v61 = vmul.f32 %v1822_v12, %v970_v59  ;;  %v973_v22 = vpop.xlane.xlu2 %972  ;;  %vm1382_vm1 = vweird.f32 %v1822_v12 }
 0x2ee   : > { %v1374_v17 = vsel %vm1371_vm0, %v1373_v52, %v1369_v29  ;;  %1823 = vrcp.f32 %v973_v22  ;;  %vm1383_vm4 = vmor %vm1381_vm3, %vm1382_vm1  ;;  %v1402_v57 = vand.u32 2147483648, %v973_v22  ;;  %v1400_v2 = vand.u32 2147483647, %v973_v22 }
 0x2ef   : > { %v1375_v41 = vmul.f32 %v2306_v11, %v1374_v17  ;;  %v1378_v9 = vsub.f32 1.0, %v1377_v61  ;;  %vm1396_vm7 = vweird.f32 %v973_v22 }
 0x2f0   : > { %v1403_v50 = vor.u32 1.1754944e-38, %v1402_v57  ;;  %vm1401_vm9 = vcmp.eq.f32.partialorder %v1400_v2, 8.507059e+37 }
 0x2f1   : > { %1491 = vst.msk [vmem:[%s2228_s13 + $0xc8] sm:$0xff] %vm697_vm2, %v1375_v41  ;;  %v1379_v3 = vmul.f32 %v1822_v12, %v1378_v9 }
 0x2f3   : > { %v1380_v34 = vadd.f32 %v1822_v12, %v1379_v3 }
 0x2f4   : > { %v1824_v27 = vpop.eup %1823 }
 0x2f5   : > { %v1384_v19 = vsel %vm1383_vm4, %v1822_v12, %v1380_v34  ;;  %v1392_v15 = vmul.f32 %v1824_v27, %v973_v22  ;;  %v976_v53 = vpop.xlane.xlu0 %975  ;;  %vm1397_vm6 = vweird.f32 %v1824_v27 }
 0x2f6   : > { %v1389_v32 = vsel %vm1386_vm5, %v1388_v6, %v1384_v19  ;;  %1825 = vrcp.f32 %v976_v53  ;;  %vm1398_vm8 = vmor %vm1396_vm7, %vm1397_vm6  ;;  %v1417_v20 = vand.u32 2147483648, %v976_v53  ;;  %v1415_v49 = vand.u32 2147483647, %v976_v53 }
 0x2f7   : > { %v1390_v11 = vmul.f32 %v2314_v36, %v1389_v32  ;;  %v1393_v1 = vsub.f32 1.0, %v1392_v15  ;;  %vm1411_vm11 = vweird.f32 %v976_v53 }
 0x2f8   : > { %v1418_v14 = vor.u32 1.1754944e-38, %v1417_v20  ;;  %vm1416_vm13 = vcmp.eq.f32.partialorder %v1415_v49, 8.507059e+37 }
 0x2f9   : > { %1492 = vst.msk [vmem:[%s2228_s13 + $0xd0] sm:$0xff] %vm697_vm2, %v1390_v11  ;;  %v1394_v39 = vmul.f32 %v1824_v27, %v1393_v1 }
 0x2fb   : > { %v1395_v18 = vadd.f32 %v1824_v27, %v1394_v39 }
 0x2fc   : > { %v1826_v7 = vpop.eup %1825 }
 0x2fd   : > { %v1399_v46 = vsel %vm1398_vm8, %v1824_v27, %v1395_v18  ;;  %v1407_v33 = vmul.f32 %v1826_v7, %v976_v53  ;;  %v979_v21 = vpop.xlane.xlu1 %978  ;;  %vm1412_vm10 = vweird.f32 %v1826_v7 }
 0x2fe   : > { %v1404_v37 = vsel %vm1401_vm9, %v1403_v50, %v1399_v46  ;;  %1827 = vrcp.f32 %v979_v21  ;;  %vm1413_vm12 = vmor %vm1411_vm11, %vm1412_vm10  ;;  %v1432_v35 = vand.u32 2147483648, %v979_v21  ;;  %v1430_v60 = vand.u32 2147483647, %v979_v21 }
 0x2ff   : > { %v1405_v36 = vmul.f32 %v2322_v23, %v1404_v37  ;;  %v1408_v47 = vsub.f32 1.0, %v1407_v33  ;;  %vm1426_vm15 = vweird.f32 %v979_v21 }
 0x300   : > { %v1433_v25 = vor.u32 1.1754944e-38, %v1432_v35  ;;  %vm1431_vm1 = vcmp.eq.f32.partialorder %v1430_v60, 8.507059e+37 }
 0x301   : > { %1493 = vst.msk [vmem:[%s2228_s13 + $0xd8] sm:$0xff] %vm697_vm2, %v1405_v36  ;;  %v1409_v38 = vmul.f32 %v1826_v7, %v1408_v47 }
 0x303   : > { %v1410_v30 = vadd.f32 %v1826_v7, %v1409_v38 }
 0x304   : > { %v1828_v44 = vpop.eup %1827 }
 0x305   : > { %v1414_v54 = vsel %vm1413_vm12, %v1826_v7, %v1410_v30  ;;  %v1422_v58 = vmul.f32 %v1828_v44, %v979_v21  ;;  %v982_v26 = vpop.xlane.xlu2 %981  ;;  %vm1427_vm14 = vweird.f32 %v1828_v44 }
 0x306   : > { %v1419_v10 = vsel %vm1416_vm13, %v1418_v14, %v1414_v54  ;;  %1829 = vrcp.f32 %v982_v26  ;;  %vm1428_vm0 = vmor %vm1426_vm15, %vm1427_vm14  ;;  %v1447_v28 = vand.u32 2147483648, %v982_v26  ;;  %v1445_v13 = vand.u32 2147483647, %v982_v26 }
 0x307   : > { %v1420_v23 = vmul.f32 %v2327_v24, %v1419_v10  ;;  %v1423_v48 = vsub.f32 1.0, %v1422_v58  ;;  %vm1441_vm4 = vweird.f32 %v982_v26 }
 0x308   : > { %v1448_v12 = vor.u32 1.1754944e-38, %v1447_v28  ;;  %vm1446_vm6 = vcmp.eq.f32.partialorder %v1445_v13, 8.507059e+37 }
 0x309   : > { %1494 = vst.msk [vmem:[%s2228_s13 + $0xe0] sm:$0xff] %vm697_vm2, %v1420_v23  ;;  %v1424_v63 = vmul.f32 %v1828_v44, %v1423_v48 }
 0x30b   : > { %v1425_v42 = vadd.f32 %v1828_v44, %v1424_v63 }
 0x30c   : > { %v1830_v0 = vpop.eup %1829 }
 0x30d   : > { %v1429_v62 = vsel %vm1428_vm0, %v1828_v44, %v1425_v42  ;;  %v1437_v8 = vmul.f32 %v1830_v0, %v982_v26  ;;  %v985_v55 = vpop.xlane.xlu0 %984  ;;  %vm1442_vm3 = vweird.f32 %v1830_v0 }
 0x30e   : > { %v1434_v59 = vsel %vm1431_vm1, %v1433_v25, %v1429_v62  ;;  %1831 = vrcp.f32 %v985_v55  ;;  %vm1443_vm5 = vmor %vm1441_vm4, %vm1442_vm3  ;;  %v1462_v17 = vand.u32 2147483648, %v985_v55  ;;  %v1460_v9 = vand.u32 2147483647, %v985_v55 }
 0x30f   : > { %v1435_v24 = vmul.f32 %v2332_v43, %v1434_v59  ;;  %v1438_v4 = vsub.f32 1.0, %v1437_v8  ;;  %vm1456_vm8 = vweird.f32 %v985_v55 }
 0x310   : > { %v1463_v3 = vor.u32 1.1754944e-38, %v1462_v17  ;;  %vm1461_vm10 = vcmp.eq.f32.partialorder %v1460_v9, 8.507059e+37 }
 0x311   : > { %1495 = vst.msk [vmem:[%s2228_s13 + $0xe8] sm:$0xff] %vm697_vm2, %v1435_v24  ;;  %v1439_v51 = vmul.f32 %v1830_v0, %v1438_v4 }
 0x313   : > { %v1440_v16 = vadd.f32 %v1830_v0, %v1439_v51 }
 0x314   : > { %v1832_v40 = vpop.eup %1831 }
 0x315   : > { %v1444_v52 = vsel %vm1443_vm5, %v1830_v0, %v1440_v16  ;;  %v1452_v29 = vmul.f32 %v1832_v40, %v985_v55  ;;  %vm1457_vm7 = vweird.f32 %v1832_v40 }
 0x316   : > { %v1449_v61 = vsel %vm1446_vm6, %v1448_v12, %v1444_v52  ;;  %vm1458_vm9 = vmor %vm1456_vm8, %vm1457_vm7 }
 0x317   : > { %v1450_v43 = vmul.f32 %v2337_v56, %v1449_v61  ;;  %v1453_v22 = vsub.f32 1.0, %v1452_v29 }
 0x319   : > { %1496 = vst.msk [vmem:[%s2228_s13 + $0xf0] sm:$0xff] %vm697_vm2, %v1450_v43  ;;  %v1454_v41 = vmul.f32 %v1832_v40, %v1453_v22 }
 0x31b   : > { %v1455_v45 = vadd.f32 %v1832_v40, %v1454_v41 }
 0x31d   : > { %v1459_v5 = vsel %vm1458_vm9, %v1832_v40, %v1455_v45 }
 0x31e   : > { %v1464_v34 = vsel %vm1461_vm10, %v1463_v3, %v1459_v5 }
 0x31f   : > { %v1465_v27 = vmul.f32 %v2347_v31, %v1464_v34 }
 0x321   : > { %1497 = vst.msk [vmem:[%s2228_s13 + $0xf8] sm:$0xff] %vm697_vm2, %v1465_v27 }
 0x322 PF: > { %s15_s18 = sadd.s32 1, %s1839_s18  }
 0x323   : > { %p12_p4 = scmp.ge.s32.totalorder %s15_s18, 6  }
 0x325   :  { %14 = sbr.rel (!%p12_p4) target bundleno = 1 (0x1), region = 70 }

</bundles_post_ra>
